<compile_context>
chip_gen: v7x
topology: tpu7x:2x2x1
jax: 0.10.0
libtpu: 0.0.40
codegen_flags: <defaults>
</compile_context>

<pallas_src>
import functools

import jax
import jax.numpy as jnp
from jax import lax
from jax.experimental import pallas as pl
from jax.experimental.pallas import tpu as pltpu


# ----------------------------------------------------------------------------
# helpers
# ----------------------------------------------------------------------------
def _round_up(x, m):
    return (x + m - 1) // m * m


def _largest_divisor(n, candidates):
    for c in candidates:
        if c <= n and n % c == 0:
            return c
    return n


def _pad_gate_cols(w, h, hg):
    """Pad the (4*h) gate-slab axis to 4*hg: each gate [i, f, g, o] zero-padded
    to hg columns so gate boundaries stay consistent with the packed layout."""
    lead = w.shape[:-1]
    w4 = w.reshape(lead + (4, h))
    pad = [(0, 0)] * len(lead) + [(0, 0), (0, hg - h)]
    return jnp.pad(w4, pad).reshape(lead + (4 * hg,))


def _pad2(w, rows, cols):
    return jnp.pad(w, ((0, rows - w.shape[0]), (0, cols - w.shape[1])))


# ----------------------------------------------------------------------------
# Kernel 1: hoisted input projection  x @ [W_ih_f | W_ih_b] + bias
#           (one row-tiled bf16 matmul for BOTH directions, f32 accumulation)
# ----------------------------------------------------------------------------
def input_proj_kernel(x_ref, w_ref, b_ref, gf_ref, gb_ref, *, gw):
    g = (jnp.dot(x_ref[...], w_ref[...], preferred_element_type=jnp.float32)
         + b_ref[...])
    gf_ref[...] = g[:, :gw]          # forward-direction gate pre-activations
    gb_ref[...] = g[:, gw:]          # backward-direction gate pre-activations


def run_input_projection(x2d, w_cat, b_cat, gw):
    n, e = x2d.shape
    tn = _largest_divisor(n, (2048, 1024, 512, 256, 128, 64, 32, 16, 8))
    return pl.pallas_call(
        functools.partial(input_proj_kernel, gw=gw),
        out_shape=(jax.ShapeDtypeStruct((n, gw), jnp.float32),
                   jax.ShapeDtypeStruct((n, gw), jnp.float32)),
        grid=(n // tn,),
        in_specs=[
            pl.BlockSpec((tn, e), lambda i: (i, 0)),
            # TODO(synk): at realistic E/H sizes, single-buffer these loop-invariant
            # weights (pipeline_mode=pl.Buffered(1) or one-time DMA) to respect
            # v7x's 64 MiB VMEM; at these sizes the duplicate buffer is negligible.
            pl.BlockSpec((e, 2 * gw), lambda i: (0, 0)),
            pl.BlockSpec((1, 2 * gw), lambda i: (0, 0)),
        ],
        out_specs=(pl.BlockSpec((tn, gw), lambda i: (i, 0)),
                   pl.BlockSpec((tn, gw), lambda i: (i, 0))),
        compiler_params=pltpu.CompilerParams(dimension_semantics=("parallel",)),
    )(x2d, w_cat, b_cat)


# ----------------------------------------------------------------------------
# Kernel 2: bidirectional recurrence + fused affine head.
#   grid = (direction, time_block); direction is "parallel" (2 TCs on v7x).
#   Backward gates are pre-reversed in time, so both directions are plain
#   forward recurrences and the kernel body is direction-agnostic.
# ----------------------------------------------------------------------------
def rec_head_kernel(g_ref, whh_hbm, whead_ref, out_ref,
                    whh_vmem, h_scr, c_scr, w_sem,
                    *, hg, t_block, unroll):
    d = pl.program_id(0)
    j = pl.program_id(1)

    @pl.when(j == 0)
    def _():
        # One-time (per direction) copy of the loop-invariant recurrent weights
        # HBM -> VMEM: single buffer, only the active direction is resident.
        cp = pltpu.make_async_copy(whh_hbm.at[d], whh_vmem, w_sem.at[0])
        cp.start()
        h_scr[...] = jnp.zeros_like(h_scr)
        c_scr[...] = jnp.zeros_like(c_scr)
        cp.wait()

    w_hh = whh_vmem[...]       # (hg, 4*hg) bf16, resident across time blocks
    w_head = whead_ref[...]    # (hg, c_pad) bf16, precomposed linear1@linear2

    def step(i, carry):
        # h/c live in vregs across the unrolled block (no vst->vld on the
        # serial dependence chain); scratch is only touched at block edges.
        h_prev, c_prev = carry
        g = g_ref[i] + jnp.dot(h_prev.astype(jnp.bfloat16), w_hh,
                               preferred_element_type=jnp.float32)
        i_g = jax.nn.sigmoid(g[:, 0 * hg:1 * hg])
        f_g = jax.nn.sigmoid(g[:, 1 * hg:2 * hg])
        g_g = jnp.tanh(g[:, 2 * hg:3 * hg])
        o_g = jax.nn.sigmoid(g[:, 3 * hg:4 * hg])
        c_new = f_g * c_prev + i_g * g_g
        h_new = o_g * jnp.tanh(c_new)
        # Fused affine head (linear2(linear1(.)) has no activation in the
        # reference): per-direction partial logits, off the serial chain.
        out_ref[i] = jnp.dot(h_new.astype(jnp.bfloat16), w_head,
                             preferred_element_type=jnp.float32)
        return (h_new, c_new)

    h_fin, c_fin = lax.fori_loop(0, t_block, step, (h_scr[...], c_scr[...]),
                                 unroll=unroll)
    h_scr[...] = h_fin
    c_scr[...] = c_fin


def run_recurrence_head(gates, whh, whead, *, hg, c_pad, t_block, b_pad, n_blocks):
    s_pad = n_blocks * t_block
    gw = 4 * hg
    # Full unroll while the live gate slab stays small; cap it for big hidden
    # sizes so the 64-vreg file does not spill onto the serial critical path.
    unroll = t_block if gw <= 512 else 4
    kernel = functools.partial(rec_head_kernel, hg=hg, t_block=t_block,
                               unroll=unroll)
    return pl.pallas_call(
        kernel,
        out_shape=jax.ShapeDtypeStruct((2, s_pad, b_pad, c_pad), jnp.float32),
        grid=(2, n_blocks),
        in_specs=[
            pl.BlockSpec((None, t_block, b_pad, gw), lambda d, j: (d, j, 0, 0)),
            pl.BlockSpec(memory_space=pl.ANY),                 # W_hh stays in HBM
            pl.BlockSpec((None, hg, c_pad), lambda d, j: (d, 0, 0)),
        ],
        out_specs=pl.BlockSpec((None, t_block, b_pad, c_pad),
                               lambda d, j: (d, j, 0, 0)),
        scratch_shapes=[
            pltpu.VMEM((hg, gw), jnp.bfloat16),      # resident W_hh (one direction)
            pltpu.VMEM((b_pad, hg), jnp.float32),    # h carry across time blocks
            pltpu.VMEM((b_pad, hg), jnp.float32),    # c carry across time blocks
            pltpu.SemaphoreType.DMA((1,)),
        ],
        compiler_params=pltpu.CompilerParams(
            dimension_semantics=("parallel", "arbitrary")),
    )(gates, whh, whead)


# ----------------------------------------------------------------------------
# Full forward pass
# ----------------------------------------------------------------------------
def bilstm_forward(x_ids, params, hidden):
    b, s = x_ids.shape
    e = params["embedding"].shape[1]
    c = params["w2"].shape[1]
    h = hidden

    hg = _round_up(h, 32)        # packed gate width: 4*hg is a multiple of 128
    gw = 4 * hg
    c_pad = _round_up(c, 128)    # lane-dense logit stores
    b_pad = _round_up(b, 8)      # full sublane occupancy
    # NOTE: padded batch rows see the real bias (zero embedding + b) and carry
    # garbage state; results are sliced off, the extra work is intentional.
    # NOTE: batch=2->8 leaves the MXU mostly idle per step; the recurrence is
    # EUP/latency bound at this size — batch more sequences per call to change that.
    t_block = min(s, 16)         # never degrades to 1-step blocks
    s_pad = _round_up(s, t_block)
    n_blocks = s_pad // t_block

    bf16 = jnp.bfloat16

    # ---- pad / fuse / precompose parameters (zero padding -> inert units) ----
    w_ih = jnp.concatenate(
        [_pad_gate_cols(params["w_ih_f"], h, hg),
         _pad_gate_cols(params["w_ih_b"], h, hg)], axis=1).astype(bf16)  # (E,2*GW)
    b_ih = jnp.concatenate(
        [_pad_gate_cols(params["b_f"], h, hg),
         _pad_gate_cols(params["b_b"], h, hg)], axis=1)                  # (1,2*GW) f32
    whh = jnp.stack(
        [_pad2(_pad_gate_cols(params["w_hh_f"], h, hg), hg, gw),
         _pad2(_pad_gate_cols(params["w_hh_b"], h, hg), hg, gw)],
        axis=0).astype(bf16)                                             # (2,hg,GW)
    # linear2(linear1(.)) is purely affine in the reference -> precompose.
    wa = params["w1"][:h] @ params["w2"]                                 # (h, C)
    wb = params["w1"][h:] @ params["w2"]                                 # (h, C)
    bias_head = params["b1"] @ params["w2"] + params["b2"]               # (1, C)
    whead = jnp.stack([_pad2(wa, hg, c_pad),
                       _pad2(wb, hg, c_pad)], axis=0).astype(bf16)       # (2,hg,Cp)

    # ---- embedding lookup (plain JAX gather glue), time-major, pad B and S ----
    # TODO(synk): embedding gather kept as jnp.take glue; an in-kernel DMA gather
    # is not worth it at these table sizes.
    x_emb = jnp.take(params["embedding"], x_ids.T, axis=0)               # (S, B, E)
    x_emb = jnp.pad(x_emb, ((0, s_pad - s), (0, b_pad - b), (0, 0)))     # (Sp,Bp,E)
    x2d = x_emb.reshape(s_pad * b_pad, e).astype(bf16)

    # ---- kernel 1: hoisted input projection, both directions in one matmul ----
    gf2d, gb2d = run_input_projection(x2d, w_ih, b_ih, gw)
    gf = gf2d.reshape(s_pad, b_pad, gw)
    gb = gb2d.reshape(s_pad, b_pad, gw)
    # Pre-reverse the backward-direction gates in time so both directions run as
    # identical forward recurrences; the (bias-only) pad steps stay at the end in
    # both directions, i.e. after every real step -> provably inert.
    gb_rev = jnp.concatenate([gb[:s][::-1], gb[s:]], axis=0)
    gates = jnp.stack([gf, gb_rev], axis=0)                              # (2,Sp,Bp,GW)

    # ---- kernel 2: recurrence + fused head, directions across cores on v7x ----
    out_parts = run_recurrence_head(gates, whh, whead, hg=hg, c_pad=c_pad,
                                    t_block=t_block, b_pad=b_pad,
                                    n_blocks=n_blocks)                   # (2,Sp,Bp,Cp)

    # ---- combine the two directions (cheap XLA glue) ----
    out = out_parts[0, :s] + out_parts[1, :s][::-1]                      # (S, Bp, Cp)
    out = out[:, :b, :c] + bias_head                                     # strip pads
    return jnp.transpose(out, (1, 0, 2))                                 # (B, S, C)


def init_params(key, feature_num, embedding_num, hidden_num, class_num):
    k = 1.0 / jnp.sqrt(hidden_num)
    keys = jax.random.split(key, 12)
    u = lambda kk, shape: jax.random.uniform(kk, shape, jnp.float32, -k, k)
    return {
        "embedding": jax.random.normal(keys[0], (feature_num, embedding_num),
                                       jnp.float32),
        # forward-direction LSTM weights (stored transposed: (in, 4H), gates i,f,g,o)
        "w_ih_f": u(keys[1], (embedding_num, 4 * hidden_num)),
        "w_hh_f": u(keys[2], (hidden_num, 4 * hidden_num)),
        "b_f":    u(keys[3], (1, 4 * hidden_num)),   # bias_ih + bias_hh combined
        # backward-direction LSTM weights
        "w_ih_b": u(keys[4], (embedding_num, 4 * hidden_num)),
        "w_hh_b": u(keys[5], (hidden_num, 4 * hidden_num)),
        "b_b":    u(keys[6], (1, 4 * hidden_num)),
        # linear1: 2H -> H, linear2: H -> C (stored transposed: (in, out))
        "w1": u(keys[7], (2 * hidden_num, hidden_num)),
        "b1": u(keys[8], (1, hidden_num)),
        "w2": u(keys[9], (hidden_num, class_num)),
        "b2": u(keys[10], (1, class_num)),
    }


if __name__ == "__main__":
    feature_num = 16
    embedding_num = 32
    hidden_num = 32
    class_num = 4
    batch, seq = 2, 8

    key = jax.random.PRNGKey(0)
    k_par, k_ids = jax.random.split(key)
    params = init_params(k_par, feature_num, embedding_num, hidden_num, class_num)
    x_ids = jax.random.randint(k_ids, (batch, seq), 0, feature_num, dtype=jnp.int32)

    fwd = jax.jit(bilstm_forward, static_argnums=2)
    out = jax.block_until_ready(fwd(x_ids, params, hidden_num))
    assert out.shape == (batch, seq, class_num), out.shape
    print("KERNEL_OK")
</pallas_src>

<mosaic_0001>
module attributes {stable_mosaic.version = 11 : i64} {
  func.func @input_proj_kernel(%arg0: i32, %arg1: memref<64x32xbf16, #tpu.memory_space<vmem>>, %arg2: memref<32x256xbf16, #tpu.memory_space<vmem>>, %arg3: memref<1x256xf32, #tpu.memory_space<vmem>>, %arg4: memref<64x128xf32, #tpu.memory_space<vmem>>, %arg5: memref<64x128xf32, #tpu.memory_space<vmem>>) attributes {dimension_semantics = [#tpu.dimension_semantics<parallel>], iteration_bounds = array<i64: 1>, scalar_prefetch = 0 : i64, scratch_operands = 0 : i64, tpu.core_type = #tpu.core_type<tc>, window_params = [{transform_indices = @transform_0, window_bounds = array<i64: 64, 32>}, {pipeline_mode = #tpu.pipeline_mode<synchronous>, transform_indices = @transform_1, window_bounds = array<i64: 32, 256>}, {pipeline_mode = #tpu.pipeline_mode<synchronous>, transform_indices = @transform_2, window_bounds = array<i64: 1, 256>}, {transform_indices = @transform_3, window_bounds = array<i64: 64, 128>}, {transform_indices = @transform_4, window_bounds = array<i64: 64, 128>}]} {
    %c0 = arith.constant 0 : index
    %c0_0 = arith.constant 0 : index
    %0 = vector.load %arg1[%c0, %c0_0] : memref<64x32xbf16, #tpu.memory_space<vmem>>, vector<64x32xbf16>
    %c0_1 = arith.constant 0 : index
    %c0_2 = arith.constant 0 : index
    %1 = vector.load %arg2[%c0_1, %c0_2] : memref<32x256xbf16, #tpu.memory_space<vmem>>, vector<32x256xbf16>
    %cst = arith.constant dense<0.000000e+00> : vector<64x256xf32>
    %2 = tpu.matmul %0, %1, %cst {dimension_numbers = #tpu.dot_dimension_numbers<[1], [0], [0], [1], [0, 0, 1, 1], [], []>} : vector<64x32xbf16>, vector<32x256xbf16>, vector<64x256xf32> -> vector<64x256xf32>
    %c0_3 = arith.constant 0 : index
    %c0_4 = arith.constant 0 : index
    %3 = vector.load %arg3[%c0_3, %c0_4] : memref<1x256xf32, #tpu.memory_space<vmem>>, vector<1x256xf32>
    %4 = vector.broadcast %3 : vector<1x256xf32> to vector<64x256xf32>
    %5 = arith.addf %2, %4 : vector<64x256xf32>
    %6 = vector.extract_strided_slice %5 {offsets = [0, 0], sizes = [64, 128], strides = [1, 1]} : vector<64x256xf32> to vector<64x128xf32>
    %c0_5 = arith.constant 0 : index
    %c0_6 = arith.constant 0 : index
    %7 = vector.load %arg4[%c0_5, %c0_6] : memref<64x128xf32, #tpu.memory_space<vmem>>, vector<64x128xf32>
    tpu.vector_store %arg4[%c0_5, %c0_6], %6 {strides = array<i32>} : memref<64x128xf32, #tpu.memory_space<vmem>>, vector<64x128xf32>,
    %8 = vector.extract_strided_slice %5 {offsets = [0, 128], sizes = [64, 128], strides = [1, 1]} : vector<64x256xf32> to vector<64x128xf32>
    %c0_7 = arith.constant 0 : index
    %c0_8 = arith.constant 0 : index
    %9 = vector.load %arg5[%c0_7, %c0_8] : memref<64x128xf32, #tpu.memory_space<vmem>>, vector<64x128xf32>
    tpu.vector_store %arg5[%c0_7, %c0_8], %8 {strides = array<i32>} : memref<64x128xf32, #tpu.memory_space<vmem>>, vector<64x128xf32>,
    return
  }
  func.func @transform_0(%arg0: i32) -> (i32, i32) {
    %c0_i32 = arith.constant 0 : i32
    %c0_i32_0 = arith.constant 0 : i32
    return %arg0, %c0_i32 : i32, i32
  }
  func.func @transform_1(%arg0: i32) -> (i32, i32) {
    %c0_i32 = arith.constant 0 : i32
    %c0_i32_0 = arith.constant 0 : i32
    %c0_i32_1 = arith.constant 0 : i32
    return %c0_i32, %c0_i32_0 : i32, i32
  }
  func.func @transform_2(%arg0: i32) -> (i32, i32) {
    %c0_i32 = arith.constant 0 : i32
    %c0_i32_0 = arith.constant 0 : i32
    %c0_i32_1 = arith.constant 0 : i32
    return %c0_i32, %c0_i32_0 : i32, i32
  }
  func.func @transform_3(%arg0: i32) -> (i32, i32) {
    %c0_i32 = arith.constant 0 : i32
    %c0_i32_0 = arith.constant 0 : i32
    return %arg0, %c0_i32 : i32, i32
  }
  func.func @transform_4(%arg0: i32) -> (i32, i32) {
    %c0_i32 = arith.constant 0 : i32
    %c0_i32_0 = arith.constant 0 : i32
    return %arg0, %c0_i32 : i32, i32
  }
}

module attributes {stable_mosaic.version = 11 : i64} {
  func.func @rec_head_kernel(%arg0: i32, %arg1: i32, %arg2: memref<1x8x8x128xf32, #tpu.memory_space<vmem>>, %arg3: memref<2x32x128xbf16, #tpu.memory_space<any>>, %arg4: memref<1x32x128xbf16, #tpu.memory_space<vmem>>, %arg5: memref<1x8x8x128xf32, #tpu.memory_space<vmem>>, %arg6: memref<32x128xbf16, #tpu.memory_space<vmem>>, %arg7: memref<8x32xf32, #tpu.memory_space<vmem>>, %arg8: memref<8x32xf32, #tpu.memory_space<vmem>>, %arg9: memref<1x!tpu.dma_semaphore, #tpu.memory_space<semaphore_mem>>) attributes {dimension_semantics = [#tpu.dimension_semantics<parallel>, #tpu.dimension_semantics<arbitrary>], iteration_bounds = array<i64: 2, 1>, scalar_prefetch = 0 : i64, scratch_operands = 4 : i64, tpu.core_type = #tpu.core_type<tc>, window_params = [{transform_indices = @transform_0, window_bounds = array<i64: 1, 8, 8, 128>}, {}, {transform_indices = @transform_2, window_bounds = array<i64: 1, 32, 128>}, {transform_indices = @transform_3, window_bounds = array<i64: 1, 8, 8, 128>}]} {
    %c0_i32 = arith.constant 0 : i32
    %0 = arith.cmpi eq, %arg1, %c0_i32 : i32
    %1 = arith.extui %0 : i1 to i32
    %c0_i32_0 = arith.constant 0 : i32
    %2 = arith.cmpi ne, %1, %c0_i32_0 : i32
    scf.if %2 {
      %c0_i32_101 = arith.constant 0 : i32
      %c0_i32_102 = arith.constant 0 : i32
      %c0_i32_103 = arith.constant 0 : i32
      %306 = tpu.memref_slice %arg3[%arg0, %c0_i32_102, %c0_i32_103] : memref<2x32x128xbf16, #tpu.memory_space<any>> -> memref<1x32x128xbf16, #tpu.memory_space<any>>
      %307 = tpu.memref_squeeze %306 : memref<1x32x128xbf16, #tpu.memory_space<any>> -> memref<32x128xbf16, #tpu.memory_space<any>>
      %308 = tpu.memref_slice %arg9[%c0_i32_101] : memref<1x!tpu.dma_semaphore, #tpu.memory_space<semaphore_mem>> -> memref<1x!tpu.dma_semaphore, #tpu.memory_space<semaphore_mem>>
      %309 = tpu.memref_squeeze %308 : memref<1x!tpu.dma_semaphore, #tpu.memory_space<semaphore_mem>> -> memref<!tpu.dma_semaphore, #tpu.memory_space<semaphore_mem>>
      tpu.enqueue_dma source(%307 : memref<32x128xbf16, #tpu.memory_space<any>>) target(%arg6 : memref<32x128xbf16, #tpu.memory_space<vmem>>) target_semaphore(%309 : memref<!tpu.dma_semaphore, #tpu.memory_space<semaphore_mem>>)
      %cst_104 = arith.constant 0.000000e+00 : f32
      %310 = vector.broadcast %cst_104 : f32 to vector<8x32xf32>
      %c0_105 = arith.constant 0 : index
      %c0_106 = arith.constant 0 : index
      %311 = vector.load %arg7[%c0_105, %c0_106] : memref<8x32xf32, #tpu.memory_space<vmem>>, vector<8x32xf32>
      tpu.vector_store %arg7[%c0_105, %c0_106], %310 {strides = array<i32>} : memref<8x32xf32, #tpu.memory_space<vmem>>, vector<8x32xf32>,
      %cst_107 = arith.constant 0.000000e+00 : f32
      %312 = vector.broadcast %cst_107 : f32 to vector<8x32xf32>
      %c0_108 = arith.constant 0 : index
      %c0_109 = arith.constant 0 : index
      %313 = vector.load %arg8[%c0_108, %c0_109] : memref<8x32xf32, #tpu.memory_space<vmem>>, vector<8x32xf32>
      tpu.vector_store %arg8[%c0_108, %c0_109], %312 {strides = array<i32>} : memref<8x32xf32, #tpu.memory_space<vmem>>, vector<8x32xf32>,
      %c0_i32_110 = arith.constant 0 : i32
      %c0_i32_111 = arith.constant 0 : i32
      %c0_i32_112 = arith.constant 0 : i32
      %314 = tpu.memref_slice %arg3[%arg0, %c0_i32_111, %c0_i32_112] : memref<2x32x128xbf16, #tpu.memory_space<any>> -> memref<1x32x128xbf16, #tpu.memory_space<any>>
      %315 = tpu.memref_squeeze %314 : memref<1x32x128xbf16, #tpu.memory_space<any>> -> memref<32x128xbf16, #tpu.memory_space<any>>
      %316 = tpu.memref_slice %arg9[%c0_i32_110] : memref<1x!tpu.dma_semaphore, #tpu.memory_space<semaphore_mem>> -> memref<1x!tpu.dma_semaphore, #tpu.memory_space<semaphore_mem>>
      %317 = tpu.memref_squeeze %316 : memref<1x!tpu.dma_semaphore, #tpu.memory_space<semaphore_mem>> -> memref<!tpu.dma_semaphore, #tpu.memory_space<semaphore_mem>>
      tpu.wait_dma2 semaphore(%317 : memref<!tpu.dma_semaphore, #tpu.memory_space<semaphore_mem>>) src(%315 : memref<32x128xbf16, #tpu.memory_space<any>>) dst(%arg6 : memref<32x128xbf16, #tpu.memory_space<vmem>>)
    } else {
    }
    %c0 = arith.constant 0 : index
    %c0_1 = arith.constant 0 : index
    %3 = vector.load %arg6[%c0, %c0_1] : memref<32x128xbf16, #tpu.memory_space<vmem>>, vector<32x128xbf16>
    %c0_2 = arith.constant 0 : index
    %c0_3 = arith.constant 0 : index
    %c0_4 = arith.constant 0 : index
    %4 = vector.load %arg4[%c0_2, %c0_3, %c0_4] : memref<1x32x128xbf16, #tpu.memory_space<vmem>>, vector<1x32x128xbf16>
    %5 = vector.shape_cast %4 : vector<1x32x128xbf16> to vector<32x128xbf16>
    %c0_5 = arith.constant 0 : index
    %c0_6 = arith.constant 0 : index
    %6 = vector.load %arg7[%c0_5, %c0_6] : memref<8x32xf32, #tpu.memory_space<vmem>>, vector<8x32xf32>
    %c0_7 = arith.constant 0 : index
    %c0_8 = arith.constant 0 : index
    %7 = vector.load %arg8[%c0_7, %c0_8] : memref<8x32xf32, #tpu.memory_space<vmem>>, vector<8x32xf32>
    %c0_i32_9 = arith.constant 0 : i32
    %c0_10 = arith.constant 0 : index
    %8 = arith.index_cast %c0_i32_9 : i32 to index
    %c0_11 = arith.constant 0 : index
    %c0_12 = arith.constant 0 : index
    %9 = vector.load %arg2[%c0_10, %8, %c0_11, %c0_12] : memref<1x8x8x128xf32, #tpu.memory_space<vmem>>, vector<1x1x8x128xf32>
    %10 = vector.shape_cast %9 : vector<1x1x8x128xf32> to vector<8x128xf32>
    %11 = arith.truncf %6 : vector<8x32xf32> to vector<8x32xbf16>
    %cst = arith.constant dense<0.000000e+00> : vector<8x128xf32>
    %12 = tpu.matmul %11, %3, %cst {dimension_numbers = #tpu.dot_dimension_numbers<[1], [0], [0], [1], [0, 0, 1, 1], [], []>} : vector<8x32xbf16>, vector<32x128xbf16>, vector<8x128xf32> -> vector<8x128xf32>
    %13 = arith.addf %10, %12 : vector<8x128xf32>
    %14 = vector.extract_strided_slice %13 {offsets = [0, 0], sizes = [8, 32], strides = [1, 1]} : vector<8x128xf32> to vector<8x32xf32>
    %15 = arith.negf %14 : vector<8x32xf32>
    %16 = math.exp %15 : vector<8x32xf32>
    %cst_13 = arith.constant 1.000000e+00 : f32
    %17 = vector.broadcast %cst_13 : f32 to vector<8x32xf32>
    %18 = arith.addf %17, %16 : vector<8x32xf32>
    %19 = arith.divf %17, %18 : vector<8x32xf32>
    %20 = vector.extract_strided_slice %13 {offsets = [0, 32], sizes = [8, 32], strides = [1, 1]} : vector<8x128xf32> to vector<8x32xf32>
    %21 = arith.negf %20 : vector<8x32xf32>
    %22 = math.exp %21 : vector<8x32xf32>
    %cst_14 = arith.constant 1.000000e+00 : f32
    %23 = vector.broadcast %cst_14 : f32 to vector<8x32xf32>
    %24 = arith.addf %23, %22 : vector<8x32xf32>
    %25 = arith.divf %23, %24 : vector<8x32xf32>
    %26 = vector.extract_strided_slice %13 {offsets = [0, 64], sizes = [8, 32], strides = [1, 1]} : vector<8x128xf32> to vector<8x32xf32>
    %27 = math.tanh %26 : vector<8x32xf32>
    %28 = vector.extract_strided_slice %13 {offsets = [0, 96], sizes = [8, 32], strides = [1, 1]} : vector<8x128xf32> to vector<8x32xf32>
    %29 = arith.negf %28 : vector<8x32xf32>
    %30 = math.exp %29 : vector<8x32xf32>
    %cst_15 = arith.constant 1.000000e+00 : f32
    %31 = vector.broadcast %cst_15 : f32 to vector<8x32xf32>
    %32 = arith.addf %31, %30 : vector<8x32xf32>
    %33 = arith.divf %31, %32 : vector<8x32xf32>
    %34 = arith.mulf %25, %7 : vector<8x32xf32>
    %35 = arith.mulf %19, %27 : vector<8x32xf32>
    %36 = arith.addf %34, %35 : vector<8x32xf32>
    %37 = math.tanh %36 : vector<8x32xf32>
    %38 = arith.mulf %33, %37 : vector<8x32xf32>
    %39 = arith.truncf %38 : vector<8x32xf32> to vector<8x32xbf16>
    %cst_16 = arith.constant dense<0.000000e+00> : vector<8x128xf32>
    %40 = tpu.matmul %39, %5, %cst_16 {dimension_numbers = #tpu.dot_dimension_numbers<[1], [0], [0], [1], [0, 0, 1, 1], [], []>} : vector<8x32xbf16>, vector<32x128xbf16>, vector<8x128xf32> -> vector<8x128xf32>
    %c0_17 = arith.constant 0 : index
    %41 = arith.index_cast %c0_i32_9 : i32 to index
    %c0_18 = arith.constant 0 : index
    %c0_19 = arith.constant 0 : index
    %42 = vector.load %arg5[%c0_17, %41, %c0_18, %c0_19] : memref<1x8x8x128xf32, #tpu.memory_space<vmem>>, vector<1x1x8x128xf32>
    %43 = vector.shape_cast %42 : vector<1x1x8x128xf32> to vector<8x128xf32>
    %44 = vector.shape_cast %40 : vector<8x128xf32> to vector<1x1x8x128xf32>
    tpu.vector_store %arg5[%c0_17, %41, %c0_18, %c0_19], %44 {strides = array<i32>} : memref<1x8x8x128xf32, #tpu.memory_space<vmem>>, vector<1x1x8x128xf32>,
    %c1_i32 = arith.constant 1 : i32
    %c0_20 = arith.constant 0 : index
    %45 = arith.index_cast %c1_i32 : i32 to index
    %c0_21 = arith.constant 0 : index
    %c0_22 = arith.constant 0 : index
    %46 = vector.load %arg2[%c0_20, %45, %c0_21, %c0_22] : memref<1x8x8x128xf32, #tpu.memory_space<vmem>>, vector<1x1x8x128xf32>
    %47 = vector.shape_cast %46 : vector<1x1x8x128xf32> to vector<8x128xf32>
    %48 = arith.truncf %38 : vector<8x32xf32> to vector<8x32xbf16>
    %cst_23 = arith.constant dense<0.000000e+00> : vector<8x128xf32>
    %49 = tpu.matmul %48, %3, %cst_23 {dimension_numbers = #tpu.dot_dimension_numbers<[1], [0], [0], [1], [0, 0, 1, 1], [], []>} : vector<8x32xbf16>, vector<32x128xbf16>, vector<8x128xf32> -> vector<8x128xf32>
    %50 = arith.addf %47, %49 : vector<8x128xf32>
    %51 = vector.extract_strided_slice %50 {offsets = [0, 0], sizes = [8, 32], strides = [1, 1]} : vector<8x128xf32> to vector<8x32xf32>
    %52 = arith.negf %51 : vector<8x32xf32>
    %53 = math.exp %52 : vector<8x32xf32>
    %cst_24 = arith.constant 1.000000e+00 : f32
    %54 = vector.broadcast %cst_24 : f32 to vector<8x32xf32>
    %55 = arith.addf %54, %53 : vector<8x32xf32>
    %56 = arith.divf %54, %55 : vector<8x32xf32>
    %57 = vector.extract_strided_slice %50 {offsets = [0, 32], sizes = [8, 32], strides = [1, 1]} : vector<8x128xf32> to vector<8x32xf32>
    %58 = arith.negf %57 : vector<8x32xf32>
    %59 = math.exp %58 : vector<8x32xf32>
    %cst_25 = arith.constant 1.000000e+00 : f32
    %60 = vector.broadcast %cst_25 : f32 to vector<8x32xf32>
    %61 = arith.addf %60, %59 : vector<8x32xf32>
    %62 = arith.divf %60, %61 : vector<8x32xf32>
    %63 = vector.extract_strided_slice %50 {offsets = [0, 64], sizes = [8, 32], strides = [1, 1]} : vector<8x128xf32> to vector<8x32xf32>
    %64 = math.tanh %63 : vector<8x32xf32>
    %65 = vector.extract_strided_slice %50 {offsets = [0, 96], sizes = [8, 32], strides = [1, 1]} : vector<8x128xf32> to vector<8x32xf32>
    %66 = arith.negf %65 : vector<8x32xf32>
    %67 = math.exp %66 : vector<8x32xf32>
    %cst_26 = arith.constant 1.000000e+00 : f32
    %68 = vector.broadcast %cst_26 : f32 to vector<8x32xf32>
    %69 = arith.addf %68, %67 : vector<8x32xf32>
    %70 = arith.divf %68, %69 : vector<8x32xf32>
    %71 = arith.mulf %62, %36 : vector<8x32xf32>
    %72 = arith.mulf %56, %64 : vector<8x32xf32>
    %73 = arith.addf %71, %72 : vector<8x32xf32>
    %74 = math.tanh %73 : vector<8x32xf32>
    %75 = arith.mulf %70, %74 : vector<8x32xf32>
    %76 = arith.truncf %75 : vector<8x32xf32> to vector<8x32xbf16>
    %cst_27 = arith.constant dense<0.000000e+00> : vector<8x128xf32>
    %77 = tpu.matmul %76, %5, %cst_27 {dimension_numbers = #tpu.dot_dimension_numbers<[1], [0], [0], [1], [0, 0, 1, 1], [], []>} : vector<8x32xbf16>, vector<32x128xbf16>, vector<8x128xf32> -> vector<8x128xf32>
    %c0_28 = arith.constant 0 : index
    %78 = arith.index_cast %c1_i32 : i32 to index
    %c0_29 = arith.constant 0 : index
    %c0_30 = arith.constant 0 : index
    %79 = vector.load %arg5[%c0_28, %78, %c0_29, %c0_30] : memref<1x8x8x128xf32, #tpu.memory_space<vmem>>, vector<1x1x8x128xf32>
    %80 = vector.shape_cast %79 : vector<1x1x8x128xf32> to vector<8x128xf32>
    %81 = vector.shape_cast %77 : vector<8x128xf32> to vector<1x1x8x128xf32>
    tpu.vector_store %arg5[%c0_28, %78, %c0_29, %c0_30], %81 {strides = array<i32>} : memref<1x8x8x128xf32, #tpu.memory_space<vmem>>, vector<1x1x8x128xf32>,
    %c2_i32 = arith.constant 2 : i32
    %c0_31 = arith.constant 0 : index
    %82 = arith.index_cast %c2_i32 : i32 to index
    %c0_32 = arith.constant 0 : index
    %c0_33 = arith.constant 0 : index
    %83 = vector.load %arg2[%c0_31, %82, %c0_32, %c0_33] : memref<1x8x8x128xf32, #tpu.memory_space<vmem>>, vector<1x1x8x128xf32>
    %84 = vector.shape_cast %83 : vector<1x1x8x128xf32> to vector<8x128xf32>
    %85 = arith.truncf %75 : vector<8x32xf32> to vector<8x32xbf16>
    %cst_34 = arith.constant dense<0.000000e+00> : vector<8x128xf32>
    %86 = tpu.matmul %85, %3, %cst_34 {dimension_numbers = #tpu.dot_dimension_numbers<[1], [0], [0], [1], [0, 0, 1, 1], [], []>} : vector<8x32xbf16>, vector<32x128xbf16>, vector<8x128xf32> -> vector<8x128xf32>
    %87 = arith.addf %84, %86 : vector<8x128xf32>
    %88 = vector.extract_strided_slice %87 {offsets = [0, 0], sizes = [8, 32], strides = [1, 1]} : vector<8x128xf32> to vector<8x32xf32>
    %89 = arith.negf %88 : vector<8x32xf32>
    %90 = math.exp %89 : vector<8x32xf32>
    %cst_35 = arith.constant 1.000000e+00 : f32
    %91 = vector.broadcast %cst_35 : f32 to vector<8x32xf32>
    %92 = arith.addf %91, %90 : vector<8x32xf32>
    %93 = arith.divf %91, %92 : vector<8x32xf32>
    %94 = vector.extract_strided_slice %87 {offsets = [0, 32], sizes = [8, 32], strides = [1, 1]} : vector<8x128xf32> to vector<8x32xf32>
    %95 = arith.negf %94 : vector<8x32xf32>
    %96 = math.exp %95 : vector<8x32xf32>
    %cst_36 = arith.constant 1.000000e+00 : f32
    %97 = vector.broadcast %cst_36 : f32 to vector<8x32xf32>
    %98 = arith.addf %97, %96 : vector<8x32xf32>
    %99 = arith.divf %97, %98 : vector<8x32xf32>
    %100 = vector.extract_strided_slice %87 {offsets = [0, 64], sizes = [8, 32], strides = [1, 1]} : vector<8x128xf32> to vector<8x32xf32>
    %101 = math.tanh %100 : vector<8x32xf32>
    %102 = vector.extract_strided_slice %87 {offsets = [0, 96], sizes = [8, 32], strides = [1, 1]} : vector<8x128xf32> to vector<8x32xf32>
    %103 = arith.negf %102 : vector<8x32xf32>
    %104 = math.exp %103 : vector<8x32xf32>
    %cst_37 = arith.constant 1.000000e+00 : f32
    %105 = vector.broadcast %cst_37 : f32 to vector<8x32xf32>
    %106 = arith.addf %105, %104 : vector<8x32xf32>
    %107 = arith.divf %105, %106 : vector<8x32xf32>
    %108 = arith.mulf %99, %73 : vector<8x32xf32>
    %109 = arith.mulf %93, %101 : vector<8x32xf32>
    %110 = arith.addf %108, %109 : vector<8x32xf32>
    %111 = math.tanh %110 : vector<8x32xf32>
    %112 = arith.mulf %107, %111 : vector<8x32xf32>
    %113 = arith.truncf %112 : vector<8x32xf32> to vector<8x32xbf16>
    %cst_38 = arith.constant dense<0.000000e+00> : vector<8x128xf32>
    %114 = tpu.matmul %113, %5, %cst_38 {dimension_numbers = #tpu.dot_dimension_numbers<[1], [0], [0], [1], [0, 0, 1, 1], [], []>} : vector<8x32xbf16>, vector<32x128xbf16>, vector<8x128xf32> -> vector<8x128xf32>
    %c0_39 = arith.constant 0 : index
    %115 = arith.index_cast %c2_i32 : i32 to index
    %c0_40 = arith.constant 0 : index
    %c0_41 = arith.constant 0 : index
    %116 = vector.load %arg5[%c0_39, %115, %c0_40, %c0_41] : memref<1x8x8x128xf32, #tpu.memory_space<vmem>>, vector<1x1x8x128xf32>
    %117 = vector.shape_cast %116 : vector<1x1x8x128xf32> to vector<8x128xf32>
    %118 = vector.shape_cast %114 : vector<8x128xf32> to vector<1x1x8x128xf32>
    tpu.vector_store %arg5[%c0_39, %115, %c0_40, %c0_41], %118 {strides = array<i32>} : memref<1x8x8x128xf32, #tpu.memory_space<vmem>>, vector<1x1x8x128xf32>,
    %c3_i32 = arith.constant 3 : i32
    %c0_42 = arith.constant 0 : index
    %119 = arith.index_cast %c3_i32 : i32 to index
    %c0_43 = arith.constant 0 : index
    %c0_44 = arith.constant 0 : index
    %120 = vector.load %arg2[%c0_42, %119, %c0_43, %c0_44] : memref<1x8x8x128xf32, #tpu.memory_space<vmem>>, vector<1x1x8x128xf32>
    %121 = vector.shape_cast %120 : vector<1x1x8x128xf32> to vector<8x128xf32>
    %122 = arith.truncf %112 : vector<8x32xf32> to vector<8x32xbf16>
    %cst_45 = arith.constant dense<0.000000e+00> : vector<8x128xf32>
    %123 = tpu.matmul %122, %3, %cst_45 {dimension_numbers = #tpu.dot_dimension_numbers<[1], [0], [0], [1], [0, 0, 1, 1], [], []>} : vector<8x32xbf16>, vector<32x128xbf16>, vector<8x128xf32> -> vector<8x128xf32>
    %124 = arith.addf %121, %123 : vector<8x128xf32>
    %125 = vector.extract_strided_slice %124 {offsets = [0, 0], sizes = [8, 32], strides = [1, 1]} : vector<8x128xf32> to vector<8x32xf32>
    %126 = arith.negf %125 : vector<8x32xf32>
    %127 = math.exp %126 : vector<8x32xf32>
    %cst_46 = arith.constant 1.000000e+00 : f32
    %128 = vector.broadcast %cst_46 : f32 to vector<8x32xf32>
    %129 = arith.addf %128, %127 : vector<8x32xf32>
    %130 = arith.divf %128, %129 : vector<8x32xf32>
    %131 = vector.extract_strided_slice %124 {offsets = [0, 32], sizes = [8, 32], strides = [1, 1]} : vector<8x128xf32> to vector<8x32xf32>
    %132 = arith.negf %131 : vector<8x32xf32>
    %133 = math.exp %132 : vector<8x32xf32>
    %cst_47 = arith.constant 1.000000e+00 : f32
    %134 = vector.broadcast %cst_47 : f32 to vector<8x32xf32>
    %135 = arith.addf %134, %133 : vector<8x32xf32>
    %136 = arith.divf %134, %135 : vector<8x32xf32>
    %137 = vector.extract_strided_slice %124 {offsets = [0, 64], sizes = [8, 32], strides = [1, 1]} : vector<8x128xf32> to vector<8x32xf32>
    %138 = math.tanh %137 : vector<8x32xf32>
    %139 = vector.extract_strided_slice %124 {offsets = [0, 96], sizes = [8, 32], strides = [1, 1]} : vector<8x128xf32> to vector<8x32xf32>
    %140 = arith.negf %139 : vector<8x32xf32>
    %141 = math.exp %140 : vector<8x32xf32>
    %cst_48 = arith.constant 1.000000e+00 : f32
    %142 = vector.broadcast %cst_48 : f32 to vector<8x32xf32>
    %143 = arith.addf %142, %141 : vector<8x32xf32>
    %144 = arith.divf %142, %143 : vector<8x32xf32>
    %145 = arith.mulf %136, %110 : vector<8x32xf32>
    %146 = arith.mulf %130, %138 : vector<8x32xf32>
    %147 = arith.addf %145, %146 : vector<8x32xf32>
    %148 = math.tanh %147 : vector<8x32xf32>
    %149 = arith.mulf %144, %148 : vector<8x32xf32>
    %150 = arith.truncf %149 : vector<8x32xf32> to vector<8x32xbf16>
    %cst_49 = arith.constant dense<0.000000e+00> : vector<8x128xf32>
    %151 = tpu.matmul %150, %5, %cst_49 {dimension_numbers = #tpu.dot_dimension_numbers<[1], [0], [0], [1], [0, 0, 1, 1], [], []>} : vector<8x32xbf16>, vector<32x128xbf16>, vector<8x128xf32> -> vector<8x128xf32>
    %c0_50 = arith.constant 0 : index
    %152 = arith.index_cast %c3_i32 : i32 to index
    %c0_51 = arith.constant 0 : index
    %c0_52 = arith.constant 0 : index
    %153 = vector.load %arg5[%c0_50, %152, %c0_51, %c0_52] : memref<1x8x8x128xf32, #tpu.memory_space<vmem>>, vector<1x1x8x128xf32>
    %154 = vector.shape_cast %153 : vector<1x1x8x128xf32> to vector<8x128xf32>
    %155 = vector.shape_cast %151 : vector<8x128xf32> to vector<1x1x8x128xf32>
    tpu.vector_store %arg5[%c0_50, %152, %c0_51, %c0_52], %155 {strides = array<i32>} : memref<1x8x8x128xf32, #tpu.memory_space<vmem>>, vector<1x1x8x128xf32>,
    %c4_i32 = arith.constant 4 : i32
    %c0_53 = arith.constant 0 : index
    %156 = arith.index_cast %c4_i32 : i32 to index
    %c0_54 = arith.constant 0 : index
    %c0_55 = arith.constant 0 : index
    %157 = vector.load %arg2[%c0_53, %156, %c0_54, %c0_55] : memref<1x8x8x128xf32, #tpu.memory_space<vmem>>, vector<1x1x8x128xf32>
    %158 = vector.shape_cast %157 : vector<1x1x8x128xf32> to vector<8x128xf32>
    %159 = arith.truncf %149 : vector<8x32xf32> to vector<8x32xbf16>
    %cst_56 = arith.constant dense<0.000000e+00> : vector<8x128xf32>
    %160 = tpu.matmul %159, %3, %cst_56 {dimension_numbers = #tpu.dot_dimension_numbers<[1], [0], [0], [1], [0, 0, 1, 1], [], []>} : vector<8x32xbf16>, vector<32x128xbf16>, vector<8x128xf32> -> vector<8x128xf32>
    %161 = arith.addf %158, %160 : vector<8x128xf32>
    %162 = vector.extract_strided_slice %161 {offsets = [0, 0], sizes = [8, 32], strides = [1, 1]} : vector<8x128xf32> to vector<8x32xf32>
    %163 = arith.negf %162 : vector<8x32xf32>
    %164 = math.exp %163 : vector<8x32xf32>
    %cst_57 = arith.constant 1.000000e+00 : f32
    %165 = vector.broadcast %cst_57 : f32 to vector<8x32xf32>
    %166 = arith.addf %165, %164 : vector<8x32xf32>
    %167 = arith.divf %165, %166 : vector<8x32xf32>
    %168 = vector.extract_strided_slice %161 {offsets = [0, 32], sizes = [8, 32], strides = [1, 1]} : vector<8x128xf32> to vector<8x32xf32>
    %169 = arith.negf %168 : vector<8x32xf32>
    %170 = math.exp %169 : vector<8x32xf32>
    %cst_58 = arith.constant 1.000000e+00 : f32
    %171 = vector.broadcast %cst_58 : f32 to vector<8x32xf32>
    %172 = arith.addf %171, %170 : vector<8x32xf32>
    %173 = arith.divf %171, %172 : vector<8x32xf32>
    %174 = vector.extract_strided_slice %161 {offsets = [0, 64], sizes = [8, 32], strides = [1, 1]} : vector<8x128xf32> to vector<8x32xf32>
    %175 = math.tanh %174 : vector<8x32xf32>
    %176 = vector.extract_strided_slice %161 {offsets = [0, 96], sizes = [8, 32], strides = [1, 1]} : vector<8x128xf32> to vector<8x32xf32>
    %177 = arith.negf %176 : vector<8x32xf32>
    %178 = math.exp %177 : vector<8x32xf32>
    %cst_59 = arith.constant 1.000000e+00 : f32
    %179 = vector.broadcast %cst_59 : f32 to vector<8x32xf32>
    %180 = arith.addf %179, %178 : vector<8x32xf32>
    %181 = arith.divf %179, %180 : vector<8x32xf32>
    %182 = arith.mulf %173, %147 : vector<8x32xf32>
    %183 = arith.mulf %167, %175 : vector<8x32xf32>
    %184 = arith.addf %182, %183 : vector<8x32xf32>
    %185 = math.tanh %184 : vector<8x32xf32>
    %186 = arith.mulf %181, %185 : vector<8x32xf32>
    %187 = arith.truncf %186 : vector<8x32xf32> to vector<8x32xbf16>
    %cst_60 = arith.constant dense<0.000000e+00> : vector<8x128xf32>
    %188 = tpu.matmul %187, %5, %cst_60 {dimension_numbers = #tpu.dot_dimension_numbers<[1], [0], [0], [1], [0, 0, 1, 1], [], []>} : vector<8x32xbf16>, vector<32x128xbf16>, vector<8x128xf32> -> vector<8x128xf32>
    %c0_61 = arith.constant 0 : index
    %189 = arith.index_cast %c4_i32 : i32 to index
    %c0_62 = arith.constant 0 : index
    %c0_63 = arith.constant 0 : index
    %190 = vector.load %arg5[%c0_61, %189, %c0_62, %c0_63] : memref<1x8x8x128xf32, #tpu.memory_space<vmem>>, vector<1x1x8x128xf32>
    %191 = vector.shape_cast %190 : vector<1x1x8x128xf32> to vector<8x128xf32>
    %192 = vector.shape_cast %188 : vector<8x128xf32> to vector<1x1x8x128xf32>
    tpu.vector_store %arg5[%c0_61, %189, %c0_62, %c0_63], %192 {strides = array<i32>} : memref<1x8x8x128xf32, #tpu.memory_space<vmem>>, vector<1x1x8x128xf32>,
    %c5_i32 = arith.constant 5 : i32
    %c0_64 = arith.constant 0 : index
    %193 = arith.index_cast %c5_i32 : i32 to index
    %c0_65 = arith.constant 0 : index
    %c0_66 = arith.constant 0 : index
    %194 = vector.load %arg2[%c0_64, %193, %c0_65, %c0_66] : memref<1x8x8x128xf32, #tpu.memory_space<vmem>>, vector<1x1x8x128xf32>
    %195 = vector.shape_cast %194 : vector<1x1x8x128xf32> to vector<8x128xf32>
    %196 = arith.truncf %186 : vector<8x32xf32> to vector<8x32xbf16>
    %cst_67 = arith.constant dense<0.000000e+00> : vector<8x128xf32>
    %197 = tpu.matmul %196, %3, %cst_67 {dimension_numbers = #tpu.dot_dimension_numbers<[1], [0], [0], [1], [0, 0, 1, 1], [], []>} : vector<8x32xbf16>, vector<32x128xbf16>, vector<8x128xf32> -> vector<8x128xf32>
    %198 = arith.addf %195, %197 : vector<8x128xf32>
    %199 = vector.extract_strided_slice %198 {offsets = [0, 0], sizes = [8, 32], strides = [1, 1]} : vector<8x128xf32> to vector<8x32xf32>
    %200 = arith.negf %199 : vector<8x32xf32>
    %201 = math.exp %200 : vector<8x32xf32>
    %cst_68 = arith.constant 1.000000e+00 : f32
    %202 = vector.broadcast %cst_68 : f32 to vector<8x32xf32>
    %203 = arith.addf %202, %201 : vector<8x32xf32>
    %204 = arith.divf %202, %203 : vector<8x32xf32>
    %205 = vector.extract_strided_slice %198 {offsets = [0, 32], sizes = [8, 32], strides = [1, 1]} : vector<8x128xf32> to vector<8x32xf32>
    %206 = arith.negf %205 : vector<8x32xf32>
    %207 = math.exp %206 : vector<8x32xf32>
    %cst_69 = arith.constant 1.000000e+00 : f32
    %208 = vector.broadcast %cst_69 : f32 to vector<8x32xf32>
    %209 = arith.addf %208, %207 : vector<8x32xf32>
    %210 = arith.divf %208, %209 : vector<8x32xf32>
    %211 = vector.extract_strided_slice %198 {offsets = [0, 64], sizes = [8, 32], strides = [1, 1]} : vector<8x128xf32> to vector<8x32xf32>
    %212 = math.tanh %211 : vector<8x32xf32>
    %213 = vector.extract_strided_slice %198 {offsets = [0, 96], sizes = [8, 32], strides = [1, 1]} : vector<8x128xf32> to vector<8x32xf32>
    %214 = arith.negf %213 : vector<8x32xf32>
    %215 = math.exp %214 : vector<8x32xf32>
    %cst_70 = arith.constant 1.000000e+00 : f32
    %216 = vector.broadcast %cst_70 : f32 to vector<8x32xf32>
    %217 = arith.addf %216, %215 : vector<8x32xf32>
    %218 = arith.divf %216, %217 : vector<8x32xf32>
    %219 = arith.mulf %210, %184 : vector<8x32xf32>
    %220 = arith.mulf %204, %212 : vector<8x32xf32>
    %221 = arith.addf %219, %220 : vector<8x32xf32>
    %222 = math.tanh %221 : vector<8x32xf32>
    %223 = arith.mulf %218, %222 : vector<8x32xf32>
    %224 = arith.truncf %223 : vector<8x32xf32> to vector<8x32xbf16>
    %cst_71 = arith.constant dense<0.000000e+00> : vector<8x128xf32>
    %225 = tpu.matmul %224, %5, %cst_71 {dimension_numbers = #tpu.dot_dimension_numbers<[1], [0], [0], [1], [0, 0, 1, 1], [], []>} : vector<8x32xbf16>, vector<32x128xbf16>, vector<8x128xf32> -> vector<8x128xf32>
    %c0_72 = arith.constant 0 : index
    %226 = arith.index_cast %c5_i32 : i32 to index
    %c0_73 = arith.constant 0 : index
    %c0_74 = arith.constant 0 : index
    %227 = vector.load %arg5[%c0_72, %226, %c0_73, %c0_74] : memref<1x8x8x128xf32, #tpu.memory_space<vmem>>, vector<1x1x8x128xf32>
    %228 = vector.shape_cast %227 : vector<1x1x8x128xf32> to vector<8x128xf32>
    %229 = vector.shape_cast %225 : vector<8x128xf32> to vector<1x1x8x128xf32>
    tpu.vector_store %arg5[%c0_72, %226, %c0_73, %c0_74], %229 {strides = array<i32>} : memref<1x8x8x128xf32, #tpu.memory_space<vmem>>, vector<1x1x8x128xf32>,
    %c6_i32 = arith.constant 6 : i32
    %c0_75 = arith.constant 0 : index
    %230 = arith.index_cast %c6_i32 : i32 to index
    %c0_76 = arith.constant 0 : index
    %c0_77 = arith.constant 0 : index
    %231 = vector.load %arg2[%c0_75, %230, %c0_76, %c0_77] : memref<1x8x8x128xf32, #tpu.memory_space<vmem>>, vector<1x1x8x128xf32>
    %232 = vector.shape_cast %231 : vector<1x1x8x128xf32> to vector<8x128xf32>
    %233 = arith.truncf %223 : vector<8x32xf32> to vector<8x32xbf16>
    %cst_78 = arith.constant dense<0.000000e+00> : vector<8x128xf32>
    %234 = tpu.matmul %233, %3, %cst_78 {dimension_numbers = #tpu.dot_dimension_numbers<[1], [0], [0], [1], [0, 0, 1, 1], [], []>} : vector<8x32xbf16>, vector<32x128xbf16>, vector<8x128xf32> -> vector<8x128xf32>
    %235 = arith.addf %232, %234 : vector<8x128xf32>
    %236 = vector.extract_strided_slice %235 {offsets = [0, 0], sizes = [8, 32], strides = [1, 1]} : vector<8x128xf32> to vector<8x32xf32>
    %237 = arith.negf %236 : vector<8x32xf32>
    %238 = math.exp %237 : vector<8x32xf32>
    %cst_79 = arith.constant 1.000000e+00 : f32
    %239 = vector.broadcast %cst_79 : f32 to vector<8x32xf32>
    %240 = arith.addf %239, %238 : vector<8x32xf32>
    %241 = arith.divf %239, %240 : vector<8x32xf32>
    %242 = vector.extract_strided_slice %235 {offsets = [0, 32], sizes = [8, 32], strides = [1, 1]} : vector<8x128xf32> to vector<8x32xf32>
    %243 = arith.negf %242 : vector<8x32xf32>
    %244 = math.exp %243 : vector<8x32xf32>
    %cst_80 = arith.constant 1.000000e+00 : f32
    %245 = vector.broadcast %cst_80 : f32 to vector<8x32xf32>
    %246 = arith.addf %245, %244 : vector<8x32xf32>
    %247 = arith.divf %245, %246 : vector<8x32xf32>
    %248 = vector.extract_strided_slice %235 {offsets = [0, 64], sizes = [8, 32], strides = [1, 1]} : vector<8x128xf32> to vector<8x32xf32>
    %249 = math.tanh %248 : vector<8x32xf32>
    %250 = vector.extract_strided_slice %235 {offsets = [0, 96], sizes = [8, 32], strides = [1, 1]} : vector<8x128xf32> to vector<8x32xf32>
    %251 = arith.negf %250 : vector<8x32xf32>
    %252 = math.exp %251 : vector<8x32xf32>
    %cst_81 = arith.constant 1.000000e+00 : f32
    %253 = vector.broadcast %cst_81 : f32 to vector<8x32xf32>
    %254 = arith.addf %253, %252 : vector<8x32xf32>
    %255 = arith.divf %253, %254 : vector<8x32xf32>
    %256 = arith.mulf %247, %221 : vector<8x32xf32>
    %257 = arith.mulf %241, %249 : vector<8x32xf32>
    %258 = arith.addf %256, %257 : vector<8x32xf32>
    %259 = math.tanh %258 : vector<8x32xf32>
    %260 = arith.mulf %255, %259 : vector<8x32xf32>
    %261 = arith.truncf %260 : vector<8x32xf32> to vector<8x32xbf16>
    %cst_82 = arith.constant dense<0.000000e+00> : vector<8x128xf32>
    %262 = tpu.matmul %261, %5, %cst_82 {dimension_numbers = #tpu.dot_dimension_numbers<[1], [0], [0], [1], [0, 0, 1, 1], [], []>} : vector<8x32xbf16>, vector<32x128xbf16>, vector<8x128xf32> -> vector<8x128xf32>
    %c0_83 = arith.constant 0 : index
    %263 = arith.index_cast %c6_i32 : i32 to index
    %c0_84 = arith.constant 0 : index
    %c0_85 = arith.constant 0 : index
    %264 = vector.load %arg5[%c0_83, %263, %c0_84, %c0_85] : memref<1x8x8x128xf32, #tpu.memory_space<vmem>>, vector<1x1x8x128xf32>
    %265 = vector.shape_cast %264 : vector<1x1x8x128xf32> to vector<8x128xf32>
    %266 = vector.shape_cast %262 : vector<8x128xf32> to vector<1x1x8x128xf32>
    tpu.vector_store %arg5[%c0_83, %263, %c0_84, %c0_85], %266 {strides = array<i32>} : memref<1x8x8x128xf32, #tpu.memory_space<vmem>>, vector<1x1x8x128xf32>,
    %c7_i32 = arith.constant 7 : i32
    %c0_86 = arith.constant 0 : index
    %267 = arith.index_cast %c7_i32 : i32 to index
    %c0_87 = arith.constant 0 : index
    %c0_88 = arith.constant 0 : index
    %268 = vector.load %arg2[%c0_86, %267, %c0_87, %c0_88] : memref<1x8x8x128xf32, #tpu.memory_space<vmem>>, vector<1x1x8x128xf32>
    %269 = vector.shape_cast %268 : vector<1x1x8x128xf32> to vector<8x128xf32>
    %270 = arith.truncf %260 : vector<8x32xf32> to vector<8x32xbf16>
    %cst_89 = arith.constant dense<0.000000e+00> : vector<8x128xf32>
    %271 = tpu.matmul %270, %3, %cst_89 {dimension_numbers = #tpu.dot_dimension_numbers<[1], [0], [0], [1], [0, 0, 1, 1], [], []>} : vector<8x32xbf16>, vector<32x128xbf16>, vector<8x128xf32> -> vector<8x128xf32>
    %272 = arith.addf %269, %271 : vector<8x128xf32>
    %273 = vector.extract_strided_slice %272 {offsets = [0, 0], sizes = [8, 32], strides = [1, 1]} : vector<8x128xf32> to vector<8x32xf32>
    %274 = arith.negf %273 : vector<8x32xf32>
    %275 = math.exp %274 : vector<8x32xf32>
    %cst_90 = arith.constant 1.000000e+00 : f32
    %276 = vector.broadcast %cst_90 : f32 to vector<8x32xf32>
    %277 = arith.addf %276, %275 : vector<8x32xf32>
    %278 = arith.divf %276, %277 : vector<8x32xf32>
    %279 = vector.extract_strided_slice %272 {offsets = [0, 32], sizes = [8, 32], strides = [1, 1]} : vector<8x128xf32> to vector<8x32xf32>
    %280 = arith.negf %279 : vector<8x32xf32>
    %281 = math.exp %280 : vector<8x32xf32>
    %cst_91 = arith.constant 1.000000e+00 : f32
    %282 = vector.broadcast %cst_91 : f32 to vector<8x32xf32>
    %283 = arith.addf %282, %281 : vector<8x32xf32>
    %284 = arith.divf %282, %283 : vector<8x32xf32>
    %285 = vector.extract_strided_slice %272 {offsets = [0, 64], sizes = [8, 32], strides = [1, 1]} : vector<8x128xf32> to vector<8x32xf32>
    %286 = math.tanh %285 : vector<8x32xf32>
    %287 = vector.extract_strided_slice %272 {offsets = [0, 96], sizes = [8, 32], strides = [1, 1]} : vector<8x128xf32> to vector<8x32xf32>
    %288 = arith.negf %287 : vector<8x32xf32>
    %289 = math.exp %288 : vector<8x32xf32>
    %cst_92 = arith.constant 1.000000e+00 : f32
    %290 = vector.broadcast %cst_92 : f32 to vector<8x32xf32>
    %291 = arith.addf %290, %289 : vector<8x32xf32>
    %292 = arith.divf %290, %291 : vector<8x32xf32>
    %293 = arith.mulf %284, %258 : vector<8x32xf32>
    %294 = arith.mulf %278, %286 : vector<8x32xf32>
    %295 = arith.addf %293, %294 : vector<8x32xf32>
    %296 = math.tanh %295 : vector<8x32xf32>
    %297 = arith.mulf %292, %296 : vector<8x32xf32>
    %298 = arith.truncf %297 : vector<8x32xf32> to vector<8x32xbf16>
    %cst_93 = arith.constant dense<0.000000e+00> : vector<8x128xf32>
    %299 = tpu.matmul %298, %5, %cst_93 {dimension_numbers = #tpu.dot_dimension_numbers<[1], [0], [0], [1], [0, 0, 1, 1], [], []>} : vector<8x32xbf16>, vector<32x128xbf16>, vector<8x128xf32> -> vector<8x128xf32>
    %c0_94 = arith.constant 0 : index
    %300 = arith.index_cast %c7_i32 : i32 to index
    %c0_95 = arith.constant 0 : index
    %c0_96 = arith.constant 0 : index
    %301 = vector.load %arg5[%c0_94, %300, %c0_95, %c0_96] : memref<1x8x8x128xf32, #tpu.memory_space<vmem>>, vector<1x1x8x128xf32>
    %302 = vector.shape_cast %301 : vector<1x1x8x128xf32> to vector<8x128xf32>
    %303 = vector.shape_cast %299 : vector<8x128xf32> to vector<1x1x8x128xf32>
    tpu.vector_store %arg5[%c0_94, %300, %c0_95, %c0_96], %303 {strides = array<i32>} : memref<1x8x8x128xf32, #tpu.memory_space<vmem>>, vector<1x1x8x128xf32>,
    %c8_i32 = arith.constant 8 : i32
    %c0_97 = arith.constant 0 : index
    %c0_98 = arith.constant 0 : index
    %304 = vector.load %arg7[%c0_97, %c0_98] : memref<8x32xf32, #tpu.memory_space<vmem>>, vector<8x32xf32>
    tpu.vector_store %arg7[%c0_97, %c0_98], %297 {strides = array<i32>} : memref<8x32xf32, #tpu.memory_space<vmem>>, vector<8x32xf32>,
    %c0_99 = arith.constant 0 : index
    %c0_100 = arith.constant 0 : index
    %305 = vector.load %arg8[%c0_99, %c0_100] : memref<8x32xf32, #tpu.memory_space<vmem>>, vector<8x32xf32>
    tpu.vector_store %arg8[%c0_99, %c0_100], %295 {strides = array<i32>} : memref<8x32xf32, #tpu.memory_space<vmem>>, vector<8x32xf32>,
    return
  }
  func.func @transform_0(%arg0: i32, %arg1: i32) -> (i32, i32, i32, i32) {
    %c0_i32 = arith.constant 0 : i32
    %c0_i32_0 = arith.constant 0 : i32
    %c0_i32_1 = arith.constant 0 : i32
    return %arg0, %arg1, %c0_i32, %c0_i32_0 : i32, i32, i32, i32
  }
  func.func @transform_2(%arg0: i32, %arg1: i32) -> (i32, i32, i32) {
    %c0_i32 = arith.constant 0 : i32
    %c0_i32_0 = arith.constant 0 : i32
    %c0_i32_1 = arith.constant 0 : i32
    return %arg0, %c0_i32, %c0_i32_0 : i32, i32, i32
  }
  func.func @transform_3(%arg0: i32, %arg1: i32) -> (i32, i32, i32, i32) {
    %c0_i32 = arith.constant 0 : i32
    %c0_i32_0 = arith.constant 0 : i32
    %c0_i32_1 = arith.constant 0 : i32
    return %arg0, %arg1, %c0_i32, %c0_i32_0 : i32, i32, i32, i32
  }
}

</mosaic_0001>

<bundles_post_ra>
// kernel: bilstm_forward.2
= control target key start
LH: loop header
LB: loop body
LE: loop exit
PB: predicated region body
PF: predicated region fallthrough
CT: control target
= control target key end

     0   :  { %v218_v1 = vmov 0   ;;  %vm81_vm0 = vcmask 261120   ;;  %v31_v9 = vlaneseq  ;;  %s319_s1 = inlined_call_operand.vmem [shape: bf16[32,256], index: 1, kind: input, shape index: {}]   ;;  %s320_s0 = inlined_call_operand.vmem [shape: bf16[64,32], index: 0, kind: input, shape index: {}]   ;;  %s321_s2 = inlined_call_operand.vmem [shape: f32[1,256], index: 2, kind: input, shape index: {}]   ;;  %s322_s3 = inlined_call_operand.vmem [shape: f32[64,128], index: 3, kind: output, shape index: {0}]   ;;  %s323_s4 = inlined_call_operand.vmem [shape: f32[64,128], index: 4, kind: output, shape index: {1}]  }
   0x1   :  { %v208_v0 = vld [vmem:[%s319_s1 + $0x4] ss:$8 sps:$4 sm:$0xff]   ;;  %126 = vmatprep.mubr.bf16.mxu0 %v218_v1  ;;  %146 = vmatprep.mubr.bf16.mxu1 %v218_v1  ;;  %v210_v2 = vld [vmem:[%s319_s1] ss:$8 sps:$4 sm:$0xff]   ;;  %v211_v3 = vld [vmem:[%s319_s1 + $0x14] ss:$8 sps:$4 sm:$0xff]  }
   0x2   :  { %94 = vmatprep.subr.bf16.mxu0 %v208_v0  ;;  %203 = vmatprep.subr.bf16.mxu1 %v208_v0  ;;  %v213_v4 = vld [vmem:[%s319_s1 + $0x10] ss:$8 sps:$4 sm:$0xff]   ;;  %v214_v5 = vld [vmem:[%s320_s0] sm:$0xff]   ;;  %v216_v7 = vld [vmem:[%s320_s0 + $0x8] sm:$0xff]   ;;  %v32_v10 = vshrl.u32 %v31_v9, 7 }
   0x3   :  { %95 = vmatpush1.bf16.msra.mxu0 %v210_v2  ;;  %205 = vmatpush1.bf16.msra.mxu1 %v210_v2  ;;  %v215_v6 = vld [vmem:[%s320_s0 + $0x10] sm:$0xff]   ;;  %v217_v8 = vld [vmem:[%s320_s0 + $0x18] sm:$0xff]   ;;  %v29_v12 = vld [vmem:[%s321_s2] sm:$0x3] }
   0x4   :  { %96 = vmatprep.subr.bf16.mxu0 %v211_v3  ;;  %204 = vmatprep.subr.bf16.mxu1 %v211_v3  ;;  %v33_v11 = vsub.s32 0, %v32_v10  ;;  %v37_v13 = vsub.s32 1, %v32_v10 }
   0x6   :  { %v34_v14 = vrot.slane %v29_v12, %v33_v11  ;;  %v38_v15 = vrot.slane %v29_v12, %v37_v13 }
   0x7   :  { %97 = vmatpush1.bf16.msra.mxu0 %v213_v4  ;;  %206 = vmatpush1.bf16.msra.mxu1 %v213_v4 }
   0xa   :  { %199 = vmatmul.mubr.msk.bf16.vlgmr.msra.gmra.mrb[0].mxu0 %vm81_vm0, %v214_v5  ;;  %201 = vmatmul.mubr.msk.bf16.vlgmr.msra.gmra.mrb[0].mxu1 %vm81_vm0, %v215_v6 }
   0xb   :  { %136 = vmatprep.mubr.bf16.mxu0 %v218_v1  ;;  %156 = vmatprep.mubr.bf16.mxu1 %v218_v1 }
  0x12   :  { %200 = vmatmul.mubr.msk.bf16.gmra.mrb[4].mxu0 %vm81_vm0, %v216_v7  ;;  %202 = vmatmul.mubr.msk.bf16.gmra.mrb[4].mxu1 %vm81_vm0, %v217_v8 }
  0xdd   :  { %v128_v16 = vpop.f32.mrb[0].mxu0  ;;  %v148_v17 = vpop.f32.mrb[0].mxu1 }
  0xde   :  { %v129_v18 = vadd.f32 %v128_v16, %v34_v14  ;;  %v149_v19 = vadd.f32 %v148_v17, %v34_v14  ;;  %v130_v20 = vpop.f32.mrb[1].mxu0  ;;  %v150_v21 = vpop.f32.mrb[1].mxu1 }
  0xdf   :  { %v131_v22 = vadd.f32 %v130_v20, %v38_v15  ;;  %v151_v23 = vadd.f32 %v150_v21, %v38_v15  ;;  %v132_v24 = vpop.f32.mrb[2].mxu0  ;;  %v152_v25 = vpop.f32.mrb[2].mxu1 }
  0xe0   :  { %167 = vst [vmem:[%s322_s3] sm:$0xff] %v129_v18  ;;  %171 = vst [vmem:[%s322_s3 + $0x20] sm:$0xff] %v149_v19  ;;  %v133_v26 = vadd.f32 %v132_v24, %v34_v14  ;;  %v153_v27 = vadd.f32 %v152_v25, %v34_v14  ;;  %v134_v28 = vpop.f32.mrb[3].mxu0  ;;  %v154_v29 = vpop.f32.mrb[3].mxu1 }
  0xe1   :  { %175 = vst [vmem:[%s323_s4] sm:$0xff] %v131_v22  ;;  %179 = vst [vmem:[%s323_s4 + $0x20] sm:$0xff] %v151_v23  ;;  %v135_v30 = vadd.f32 %v134_v28, %v38_v15  ;;  %v155_v31 = vadd.f32 %v154_v29, %v38_v15 }
  0xe2   :  { %168 = vst [vmem:[%s322_s3 + $0x8] sm:$0xff] %v133_v26  ;;  %172 = vst [vmem:[%s322_s3 + $0x28] sm:$0xff] %v153_v27 }
  0xe3   :  { %176 = vst [vmem:[%s323_s4 + $0x8] sm:$0xff] %v135_v30  ;;  %180 = vst [vmem:[%s323_s4 + $0x28] sm:$0xff] %v155_v31 }
  0xe5   :  { %v138_v32 = vpop.f32.mrb[4].mxu0  ;;  %v158_v33 = vpop.f32.mrb[4].mxu1 }
  0xe6   :  { %v139_v34 = vadd.f32 %v138_v32, %v34_v14  ;;  %v159_v35 = vadd.f32 %v158_v33, %v34_v14  ;;  %v140_v36 = vpop.f32.mrb[5].mxu0  ;;  %v160_v37 = vpop.f32.mrb[5].mxu1 }
  0xe7   :  { %v141_v38 = vadd.f32 %v140_v36, %v38_v15  ;;  %v161_v39 = vadd.f32 %v160_v37, %v38_v15  ;;  %v142_v40 = vpop.f32.mrb[6].mxu0  ;;  %v162_v41 = vpop.f32.mrb[6].mxu1 }
  0xe8   :  { %169 = vst [vmem:[%s322_s3 + $0x10] sm:$0xff] %v139_v34  ;;  %173 = vst [vmem:[%s322_s3 + $0x30] sm:$0xff] %v159_v35  ;;  %v143_v42 = vadd.f32 %v142_v40, %v34_v14  ;;  %v163_v43 = vadd.f32 %v162_v41, %v34_v14  ;;  %v144_v44 = vpop.f32.mrb[7].mxu0  ;;  %v164_v45 = vpop.f32.mrb[7].mxu1 }
  0xe9   :  { %177 = vst [vmem:[%s323_s4 + $0x10] sm:$0xff] %v141_v38  ;;  %181 = vst [vmem:[%s323_s4 + $0x30] sm:$0xff] %v161_v39  ;;  %v145_v46 = vadd.f32 %v144_v44, %v38_v15  ;;  %v165_v47 = vadd.f32 %v164_v45, %v38_v15 }
  0xea   :  { %170 = vst [vmem:[%s322_s3 + $0x18] sm:$0xff] %v143_v42  ;;  %174 = vst [vmem:[%s322_s3 + $0x38] sm:$0xff] %v163_v43 }
  0xeb   :  { %178 = vst [vmem:[%s323_s4 + $0x18] sm:$0xff] %v145_v46  ;;  %182 = vst [vmem:[%s323_s4 + $0x38] sm:$0xff] %v165_v47 }

// kernel: bilstm_forward.3
= control target key start
LH: loop header
LB: loop body
LE: loop exit
PB: predicated region body
PF: predicated region fallthrough
CT: control target
= control target key end

     0   :  { %s1725_s12 = smov 0   ;;  %s1727_s13 = smov 0   ;;  %s1948_s0 = inlined_call_operand.vmem [shape: f32[2,8,8,128], index: 0, kind: input, shape index: {}]   ;;  %s1949_s1 = inlined_call_operand.vmem [shape: bf16[2,32,128], index: 1, kind: input, shape index: {}]   ;;  %s1950_s2 = inlined_call_operand.vmem [shape: bf16[2,32,128], index: 2, kind: input, shape index: {}]   ;;  %s1951_s3 = inlined_call_operand.vmem [shape: f32[2,8,8,128], index: 3, kind: output, shape index: {}]  }
   0x1   :  { %s1729_s14 = smov 0  }
   0x2 LB: > { %s25_s15 = sadd.s32 1, %s1694_s13  ;;  %p1347_p0 = scmp.ge.s32.totalorder %s1698_s14, 1  ;;  %s1698_s14 = sphi %s1729_s14, %s13_s14   ;;  %s1694_s13 = sphi %s1727_s13, %s1953_s13   ;;  %s1690_s12 = sphi %s1725_s12, %s1952_s12  }
   0x3   : > { %p27_p1 = scmp.ge.s32.totalorder %s25_s15, 2  ;;  %p144_p2 = scmp.lt.s32.totalorder %s1698_s14, 3 }
   0x5   : > { %s1955_s15 = smov (%p27_p1, %s25_s15), 0  ;;  %p145_p3 = pnand %p1347_p0, %p144_p2 }
   0x6   : > { %p180_p4 = scmp.lt.s32.totalorder (!%p145_p3), %s1690_s12, 1  ;;  %s1402_s16 = sshll.u32 (!%p145_p3), %s1690_s12, 4 }
   0x7   : > { %148 = sbr.rel (%p145_p3) target bundleno = 5876 (0x16f4), region = 28  ;;  %s211_s19 = scalar_lea.vmem (!%p145_p3), %s1949_s1, %s1402_s16 }
   0x8   : > { %v1746_v0 = vld [vmem:[%s211_s19] sm:$0xff] (!%p145_p3)  ;;  %v1748_v1 = vld [vmem:[%s211_s19 + $0x8] sm:$0xff] (!%p145_p3) }
   0xe   : > { %s1957_s12 = smov (!%p180_p4, %s1690_s12), 1 }
   0xf   : > { %s1399_s20 = sshll.u32 %s1957_s12, 6  ;;  %s1400_s21 = sshll.u32 %s1957_s12, 4 }
  0x10   : > { %s1753_s24 = scalar_lea.vmem %s1948_s0, %s1399_s20  ;;  %s1758_s27 = scalar_lea.vmem %s1950_s2, %s1400_s21 }
  0x11   : > { %s1763_s30 = scalar_lea.vmem %s1951_s3, %s1399_s20 }
  0x12   : > { %255 = vsyncadd [#allocation5], 256  ;;  %vm256_vm0 = vcmask 261120   ;;  %v1700_v2 = vmov 0.0  }
  0x13   : > { %257 = vst.msk [vmem:[#allocation3] sm:$0xff] %vm256_vm0, %v1700_v2  ;;  %258 = vst.msk [vmem:[#allocation4] sm:$0xff] %vm256_vm0, %v1700_v2 }
  0x14   : > { %1686 = dma.done.wait [#allocation5], 256 }
  0x15   : > { %1687 = vsyncadd [#allocation5], 4294967040  ;;  %1451 = vmatprep.subr.bf16.mxu0 %v1700_v2  ;;  %1459 = vmatprep.subr.bf16.mxu1 %v1700_v2  ;;  %vm1701_vm1 = vmmov 0   ;;  %v271_v5 = vld [vmem:[%s1753_s24] sm:$0xff]  ;;  %s1702_s4 = smov 64   ;;  %s1703_s5 = smov 32  }
  0x16   : > { %1452 = vmatpush3.bf16.msra.mxu0 %v1746_v0  ;;  %1455 = vmatprep.mubr.msk.bf16.mxu0 %vm1701_vm1, %v1700_v2  ;;  %v1791_v23 = vld [vmem:[%s1758_s27] sm:$0xff]   ;;  %v1795_v24 = vld [vmem:[%s1758_s27 + $0x8] sm:$0xff]   ;;  %v1366_v55 = vld [vmem:[%s1753_s24 + $0x10] sm:$0xff]  ;;  %s1704_s6 = smov 96  }
  0x17   : > { %1453 = vmatprep.subr.bf16.mxu0 %v1700_v2  ;;  %1463 = vmatprep.mubr.msk.bf16.mxu1 %vm1701_vm1, %v1700_v2  ;;  %v1361_v30 = vld [vmem:[%s1753_s24 + $0x8] sm:$0xff] }
  0x18   : > { %1460 = vmatpush3.bf16.msra.mxu1 %v1791_v23 }
  0x19   : > { %1461 = vmatprep.subr.bf16.mxu1 %v1700_v2 }
  0x1a   : > { %1454 = vmatpush3.bf16.msra.mxu0 %v1748_v1  ;;  %v269_v3 = vld [vmem:[#allocation3] sm:$0xff]  ;;  %v270_v12 = vld [vmem:[#allocation4] sm:$0xff] }
  0x1b   : > { %1467 = vmatprep.subr.bf16.mxu0 %v1700_v2  ;;  %v272_v4 = vpack.c.bf16 %v269_v3, %v269_v3 }
  0x1c   : > { %1462 = vmatpush3.bf16.msra.mxu1 %v1795_v24 }
  0x1d   : > { %1456 = vmatmul.mubr.msk.bf16.vlgmr.msra.gmra.mrb[0].mxu0 %vm256_vm0, %v272_v4  ;;  %1475 = vmatprep.subr.bf16.mxu1 %v1700_v2 }
  0x1e   : > { %1468 = vmatpush3.bf16.msra.mxu0 %v1746_v0  ;;  %1471 = vmatprep.mubr.msk.bf16.mxu0 %vm1701_vm1, %v1700_v2 }
  0x1f   : > { %1469 = vmatprep.subr.bf16.mxu0 %v1700_v2 }
  0x22   : > { %1470 = vmatpush3.bf16.msra.mxu0 %v1748_v1 }
  0x23   : > { %1483 = vmatprep.subr.bf16.mxu0 %v1700_v2 }
  0xf0   : > { %v311_v6 = vpop.f32.mrb[0].mxu0 }
  0xf1   : > { %v317_v7 = vadd.f32 %v311_v6, %v271_v5  ;;  %v1457_v8 = vpop.f32.mrb[1].mxu0 }
  0xf2   : > { %v314_v9 = vpop.f32.mrb[2].mxu0 }
  0xf3   : > { %1610 = vtanh.f32 %v317_v7  ;;  %v1458_v10 = vpop.f32.mrb[3].mxu0  ;;  %v1357_v13 = vmul.f32 -1.442695, %v317_v7 }
  0xf5   : > { %1612 = vpow2.f32 %v1357_v13 }
  0xfd   : > { %v1611_v11 = vpop.eup %1610 }
  0xfe   : > { %331 = vrot.lane.b32.xlu0 %v1611_v11, %s1702_s4 }
  0xff   : > { %v1613_v14 = vpop.eup %1612 }
 0x100   : > { %v321_v15 = vadd.f32 1.0, %v1613_v14 }
 0x102   : > { %326 = vrot.lane.b32.xlu0 %v270_v12, %s1703_s5  ;;  %1614 = vrcp.f32 %v321_v15 }
 0x10c   : > { %v1615_v16 = vpop.eup %1614 }
 0x170   : > { %v332_v17 = vpop.permute.xlu0 %331 }
 0x171   : > { %v334_v18 = vmul.f32 %v1615_v16, %v332_v17 }
 0x173   : > { %336 = vrot.lane.b32.xlu1 %v334_v18, %s1703_s5 }
 0x174   : > { %v327_v19 = vpop.permute.xlu0 %326 }
 0x175   : > { %v329_v20 = vmul.f32 %v1615_v16, %v327_v19  ;;  %v1371_v19 = vld [vmem:[%s1753_s24 + $0x18] sm:$0xff] }
 0x1e5   : > { %v337_v21 = vpop.permute.xlu1 %336 }
 0x1e6   : > { %v339_v22 = vadd.f32 %v337_v21, %v329_v20 }
 0x1e8   : > { %1616 = vtanh.f32 %v339_v22 }
 0x1f2   : > { %v1617_v25 = vpop.eup %1616 }
 0x1f3   : > { %342 = vrot.lane.b32.xlu1 %v1617_v25, %s1702_s4 }
 0x265   : > { %v343_v26 = vpop.permute.xlu1 %342 }
 0x266   : > { %v345_v27 = vmul.f32 %v1615_v16, %v343_v26 }
 0x268   : > { %v346_v28 = vpack.c.bf16 %v345_v27, %v345_v27 }
 0x26a   : > { %348 = vrot.lane.b32.xlu0 %v346_v28, %s1703_s5 }
 0x2dc   : > { %v349_v29 = vpop.permute.xlu0 %348 }
 0x2dd   : > { %1464 = vmatmul.mubr.msk.bf16.vlgmr.msra.gmra.mrb[0].mxu1 %vm256_vm0, %v349_v29  ;;  %1472 = vmatmul.mubr.msk.bf16.vlgmr.msra.gmra.mrb[4].mxu0 %vm256_vm0, %v349_v29 }
 0x2de   : > { %1484 = vmatpush3.bf16.msra.mxu0 %v1746_v0  ;;  %1476 = vmatpush3.bf16.msra.mxu1 %v1791_v23 }
 0x2df   : > { %1485 = vmatprep.subr.bf16.mxu0 %v1700_v2  ;;  %1477 = vmatprep.subr.bf16.mxu1 %v1700_v2 }
 0x2e0   : > { %1487 = vmatprep.mubr.msk.bf16.mxu0 %vm1701_vm1, %v1700_v2  ;;  %1479 = vmatprep.mubr.msk.bf16.mxu1 %vm1701_vm1, %v1700_v2 }
 0x2e2   : > { %1486 = vmatpush3.bf16.msra.mxu0 %v1748_v1  ;;  %1478 = vmatpush3.bf16.msra.mxu1 %v1795_v24 }
 0x2e3   : > { %1499 = vmatprep.subr.bf16.mxu0 %v1700_v2  ;;  %1491 = vmatprep.subr.bf16.mxu1 %v1700_v2 }
 0x3b0   : > { %v399_v31 = vpop.f32.mrb[0].mxu1  ;;  %v442_v32 = vpop.f32.mrb[4].mxu0 }
 0x3b1   : > { %405 = vst [vmem:[%s1763_s30] sm:$0xff] %v399_v31  ;;  %v448_v33 = vadd.f32 %v1361_v30, %v442_v32  ;;  %v1465_v34 = vpop.f32.mrb[1].mxu1  ;;  %v1473_v35 = vpop.f32.mrb[5].mxu0 }
 0x3b2   : > { %v402_v36 = vpop.f32.mrb[2].mxu1  ;;  %v445_v37 = vpop.f32.mrb[6].mxu0 }
 0x3b3   : > { %1618 = vtanh.f32 %v448_v33  ;;  %v1466_v38 = vpop.f32.mrb[3].mxu1  ;;  %v1474_v39 = vpop.f32.mrb[7].mxu0  ;;  %v1363_v41 = vmul.f32 -1.442695, %v448_v33 }
 0x3b5   : > { %1620 = vpow2.f32 %v1363_v41 }
 0x3bd   : > { %v1619_v40 = vpop.eup %1618 }
 0x3be   : > { %458 = vrot.lane.b32.xlu1 %v1619_v40, %s1702_s4 }
 0x3bf   : > { %v1621_v42 = vpop.eup %1620 }
 0x3c0   : > { %v452_v43 = vadd.f32 1.0, %v1621_v42 }
 0x3c2   : > { %1622 = vrcp.f32 %v452_v43 }
 0x3cc   : > { %v1623_v44 = vpop.eup %1622 }
 0x3cd   : > { %v456_v47 = vmul.f32 %v1623_v44, %v339_v22 }
 0x430   : > { %v459_v45 = vpop.permute.xlu1 %458 }
 0x431   : > { %v461_v46 = vmul.f32 %v1623_v44, %v459_v45 }
 0x433   : > { %463 = vrot.lane.b32.xlu0 %v461_v46, %s1703_s5  ;;  %v1376_v46 = vld [vmem:[%s1753_s24 + $0x20] sm:$0xff] }
 0x4a5   : > { %v464_v48 = vpop.permute.xlu0 %463 }
 0x4a6   : > { %v466_v49 = vadd.f32 %v464_v48, %v456_v47 }
 0x4a8   : > { %1624 = vtanh.f32 %v466_v49 }
 0x4b2   : > { %v1625_v50 = vpop.eup %1624 }
 0x4b3   : > { %469 = vrot.lane.b32.xlu1 %v1625_v50, %s1702_s4 }
 0x525   : > { %v470_v51 = vpop.permute.xlu1 %469 }
 0x526   : > { %v472_v52 = vmul.f32 %v1623_v44, %v470_v51 }
 0x528   : > { %v473_v53 = vpack.c.bf16 %v472_v52, %v472_v52 }
 0x52a   : > { %475 = vrot.lane.b32.xlu0 %v473_v53, %s1703_s5 }
 0x59c   : > { %v476_v54 = vpop.permute.xlu0 %475 }
 0x59d   : > { %1480 = vmatmul.mubr.msk.bf16.vlgmr.msra.gmra.mrb[4].mxu1 %vm256_vm0, %v476_v54  ;;  %1488 = vmatmul.mubr.msk.bf16.vlgmr.msra.gmra.mrb[8].mxu0 %vm256_vm0, %v476_v54 }
 0x59e   : > { %1500 = vmatpush3.bf16.msra.mxu0 %v1746_v0  ;;  %1492 = vmatpush3.bf16.msra.mxu1 %v1791_v23 }
 0x59f   : > { %1501 = vmatprep.subr.bf16.mxu0 %v1700_v2  ;;  %1493 = vmatprep.subr.bf16.mxu1 %v1700_v2 }
 0x5a0   : > { %1503 = vmatprep.mubr.msk.bf16.mxu0 %vm1701_vm1, %v1700_v2  ;;  %1495 = vmatprep.mubr.msk.bf16.mxu1 %vm1701_vm1, %v1700_v2 }
 0x5a2   : > { %1502 = vmatpush3.bf16.msra.mxu0 %v1748_v1  ;;  %1494 = vmatpush3.bf16.msra.mxu1 %v1795_v24 }
 0x5a3   : > { %1515 = vmatprep.subr.bf16.mxu0 %v1700_v2  ;;  %1507 = vmatprep.subr.bf16.mxu1 %v1700_v2 }
 0x670   : > { %v514_v56 = vpop.f32.mrb[4].mxu1  ;;  %v558_v57 = vpop.f32.mrb[8].mxu0 }
 0x671   : > { %1365 = vst [vmem:[%s1763_s30 + $0x8] sm:$0xff] %v514_v56  ;;  %v564_v58 = vadd.f32 %v1366_v55, %v558_v57  ;;  %v1481_v59 = vpop.f32.mrb[5].mxu1  ;;  %v1489_v60 = vpop.f32.mrb[9].mxu0 }
 0x672   : > { %v517_v61 = vpop.f32.mrb[6].mxu1  ;;  %v561_v62 = vpop.f32.mrb[10].mxu0 }
 0x673   : > { %1626 = vtanh.f32 %v564_v58  ;;  %v1482_v63 = vpop.f32.mrb[7].mxu1  ;;  %v1490_v3 = vpop.f32.mrb[11].mxu0  ;;  %v1368_v5 = vmul.f32 -1.442695, %v564_v58 }
 0x675   : > { %1628 = vpow2.f32 %v1368_v5 }
 0x67d   : > { %v1627_v4 = vpop.eup %1626 }
 0x67e   : > { %574 = vrot.lane.b32.xlu1 %v1627_v4, %s1702_s4 }
 0x67f   : > { %v1629_v6 = vpop.eup %1628 }
 0x680   : > { %v568_v7 = vadd.f32 1.0, %v1629_v6 }
 0x682   : > { %1630 = vrcp.f32 %v568_v7 }
 0x68c   : > { %v1631_v8 = vpop.eup %1630 }
 0x68d   : > { %v572_v11 = vmul.f32 %v1631_v8, %v466_v49 }
 0x6f0   : > { %v575_v9 = vpop.permute.xlu1 %574 }
 0x6f1   : > { %v577_v10 = vmul.f32 %v1631_v8, %v575_v9 }
 0x6f3   : > { %579 = vrot.lane.b32.xlu0 %v577_v10, %s1703_s5  ;;  %v1381_v10 = vld [vmem:[%s1753_s24 + $0x28] sm:$0xff] }
 0x765   : > { %v580_v12 = vpop.permute.xlu0 %579 }
 0x766   : > { %v582_v13 = vadd.f32 %v580_v12, %v572_v11 }
 0x768   : > { %1632 = vtanh.f32 %v582_v13 }
 0x772   : > { %v1633_v14 = vpop.eup %1632 }
 0x773   : > { %585 = vrot.lane.b32.xlu1 %v1633_v14, %s1702_s4 }
 0x7e5   : > { %v586_v15 = vpop.permute.xlu1 %585 }
 0x7e6   : > { %v588_v16 = vmul.f32 %v1631_v8, %v586_v15 }
 0x7e8   : > { %v589_v17 = vpack.c.bf16 %v588_v16, %v588_v16 }
 0x7ea   : > { %591 = vrot.lane.b32.xlu0 %v589_v17, %s1703_s5 }
 0x85c   : > { %v592_v18 = vpop.permute.xlu0 %591 }
 0x85d   : > { %1496 = vmatmul.mubr.msk.bf16.vlgmr.msra.gmra.mrb[8].mxu1 %vm256_vm0, %v592_v18  ;;  %1504 = vmatmul.mubr.msk.bf16.vlgmr.msra.gmra.mrb[12].mxu0 %vm256_vm0, %v592_v18 }
 0x85e   : > { %1516 = vmatpush3.bf16.msra.mxu0 %v1746_v0  ;;  %1508 = vmatpush3.bf16.msra.mxu1 %v1791_v23 }
 0x85f   : > { %1517 = vmatprep.subr.bf16.mxu0 %v1700_v2  ;;  %1509 = vmatprep.subr.bf16.mxu1 %v1700_v2 }
 0x860   : > { %1519 = vmatprep.mubr.msk.bf16.mxu0 %vm1701_vm1, %v1700_v2  ;;  %1511 = vmatprep.mubr.msk.bf16.mxu1 %vm1701_vm1, %v1700_v2 }
 0x862   : > { %1518 = vmatpush3.bf16.msra.mxu0 %v1748_v1  ;;  %1510 = vmatpush3.bf16.msra.mxu1 %v1795_v24 }
 0x863   : > { %1531 = vmatprep.subr.bf16.mxu0 %v1700_v2  ;;  %1523 = vmatprep.subr.bf16.mxu1 %v1700_v2 }
 0x930   : > { %v630_v20 = vpop.f32.mrb[8].mxu1  ;;  %v674_v21 = vpop.f32.mrb[12].mxu0 }
 0x931   : > { %1370 = vst [vmem:[%s1763_s30 + $0x10] sm:$0xff] %v630_v20  ;;  %v680_v22 = vadd.f32 %v1371_v19, %v674_v21  ;;  %v1497_v25 = vpop.f32.mrb[9].mxu1  ;;  %v1505_v26 = vpop.f32.mrb[13].mxu0 }
 0x932   : > { %v633_v27 = vpop.f32.mrb[10].mxu1  ;;  %v677_v28 = vpop.f32.mrb[14].mxu0 }
 0x933   : > { %1634 = vtanh.f32 %v680_v22  ;;  %v1498_v29 = vpop.f32.mrb[11].mxu1  ;;  %v1506_v30 = vpop.f32.mrb[15].mxu0  ;;  %v1373_v32 = vmul.f32 -1.442695, %v680_v22 }
 0x935   : > { %1636 = vpow2.f32 %v1373_v32 }
 0x93d   : > { %v1635_v31 = vpop.eup %1634 }
 0x93e   : > { %690 = vrot.lane.b32.xlu1 %v1635_v31, %s1702_s4 }
 0x93f   : > { %v1637_v33 = vpop.eup %1636 }
 0x940   : > { %v684_v34 = vadd.f32 1.0, %v1637_v33 }
 0x942   : > { %1638 = vrcp.f32 %v684_v34 }
 0x94c   : > { %v1639_v35 = vpop.eup %1638 }
 0x94d   : > { %v688_v38 = vmul.f32 %v1639_v35, %v582_v13 }
 0x9b0   : > { %v691_v36 = vpop.permute.xlu1 %690 }
 0x9b1   : > { %v693_v37 = vmul.f32 %v1639_v35, %v691_v36 }
 0x9b3   : > { %695 = vrot.lane.b32.xlu0 %v693_v37, %s1703_s5  ;;  %v1386_v37 = vld [vmem:[%s1753_s24 + $0x30] sm:$0xff] }
 0xa25   : > { %v696_v39 = vpop.permute.xlu0 %695 }
 0xa26   : > { %v698_v40 = vadd.f32 %v696_v39, %v688_v38 }
 0xa28   : > { %1640 = vtanh.f32 %v698_v40 }
 0xa32   : > { %v1641_v41 = vpop.eup %1640 }
 0xa33   : > { %701 = vrot.lane.b32.xlu1 %v1641_v41, %s1702_s4 }
 0xaa5   : > { %v702_v42 = vpop.permute.xlu1 %701 }
 0xaa6   : > { %v704_v43 = vmul.f32 %v1639_v35, %v702_v42 }
 0xaa8   : > { %v705_v44 = vpack.c.bf16 %v704_v43, %v704_v43 }
 0xaaa   : > { %707 = vrot.lane.b32.xlu0 %v705_v44, %s1703_s5 }
 0xb1c   : > { %v708_v45 = vpop.permute.xlu0 %707 }
 0xb1d   : > { %1512 = vmatmul.mubr.msk.bf16.vlgmr.msra.gmra.mrb[12].mxu1 %vm256_vm0, %v708_v45  ;;  %1520 = vmatmul.mubr.msk.bf16.vlgmr.msra.gmra.mrb[16].mxu0 %vm256_vm0, %v708_v45 }
 0xb1e   : > { %1532 = vmatpush3.bf16.msra.mxu0 %v1746_v0  ;;  %1524 = vmatpush3.bf16.msra.mxu1 %v1791_v23 }
 0xb1f   : > { %1533 = vmatprep.subr.bf16.mxu0 %v1700_v2  ;;  %1525 = vmatprep.subr.bf16.mxu1 %v1700_v2 }
 0xb20   : > { %1535 = vmatprep.mubr.msk.bf16.mxu0 %vm1701_vm1, %v1700_v2  ;;  %1527 = vmatprep.mubr.msk.bf16.mxu1 %vm1701_vm1, %v1700_v2 }
 0xb22   : > { %1534 = vmatpush3.bf16.msra.mxu0 %v1748_v1  ;;  %1526 = vmatpush3.bf16.msra.mxu1 %v1795_v24 }
 0xb23   : > { %1547 = vmatprep.subr.bf16.mxu0 %v1700_v2  ;;  %1539 = vmatprep.subr.bf16.mxu1 %v1700_v2 }
 0xbf0   : > { %v746_v47 = vpop.f32.mrb[12].mxu1  ;;  %v790_v48 = vpop.f32.mrb[16].mxu0 }
 0xbf1   : > { %1375 = vst [vmem:[%s1763_s30 + $0x18] sm:$0xff] %v746_v47  ;;  %v796_v49 = vadd.f32 %v1376_v46, %v790_v48  ;;  %v1513_v50 = vpop.f32.mrb[13].mxu1  ;;  %v1521_v51 = vpop.f32.mrb[17].mxu0 }
 0xbf2   : > { %v749_v52 = vpop.f32.mrb[14].mxu1  ;;  %v793_v53 = vpop.f32.mrb[18].mxu0 }
 0xbf3   : > { %1642 = vtanh.f32 %v796_v49  ;;  %v1514_v54 = vpop.f32.mrb[15].mxu1  ;;  %v1522_v55 = vpop.f32.mrb[19].mxu0  ;;  %v1378_v57 = vmul.f32 -1.442695, %v796_v49 }
 0xbf5   : > { %1644 = vpow2.f32 %v1378_v57 }
 0xbfd   : > { %v1643_v56 = vpop.eup %1642 }
 0xbfe   : > { %806 = vrot.lane.b32.xlu1 %v1643_v56, %s1702_s4 }
 0xbff   : > { %v1645_v58 = vpop.eup %1644 }
 0xc00   : > { %v800_v59 = vadd.f32 1.0, %v1645_v58 }
 0xc02   : > { %1646 = vrcp.f32 %v800_v59 }
 0xc0c   : > { %v1647_v60 = vpop.eup %1646 }
 0xc0d   : > { %v804_v63 = vmul.f32 %v1647_v60, %v698_v40 }
 0xc70   : > { %v807_v61 = vpop.permute.xlu1 %806 }
 0xc71   : > { %v809_v62 = vmul.f32 %v1647_v60, %v807_v61 }
 0xc73   : > { %811 = vrot.lane.b32.xlu0 %v809_v62, %s1703_s5 }
 0xce5   : > { %v812_v3 = vpop.permute.xlu0 %811 }
 0xce6   : > { %v814_v4 = vadd.f32 %v812_v3, %v804_v63 }
 0xce8   : > { %1648 = vtanh.f32 %v814_v4 }
 0xcf2   : > { %v1649_v5 = vpop.eup %1648 }
 0xcf3   : > { %817 = vrot.lane.b32.xlu1 %v1649_v5, %s1702_s4 }
 0xd65   : > { %v818_v6 = vpop.permute.xlu1 %817 }
 0xd66   : > { %v820_v7 = vmul.f32 %v1647_v60, %v818_v6  ;;  %v1391_v60 = vld [vmem:[%s1753_s24 + $0x38] sm:$0xff] }
 0xd68   : > { %v821_v8 = vpack.c.bf16 %v820_v7, %v820_v7 }
 0xd6a   : > { %823 = vrot.lane.b32.xlu0 %v821_v8, %s1703_s5 }
 0xddc   : > { %v824_v9 = vpop.permute.xlu0 %823 }
 0xddd   : > { %1528 = vmatmul.mubr.msk.bf16.vlgmr.msra.gmra.mrb[16].mxu1 %vm256_vm0, %v824_v9  ;;  %1536 = vmatmul.mubr.msk.bf16.vlgmr.msra.gmra.mrb[20].mxu0 %vm256_vm0, %v824_v9 }
 0xdde   : > { %1548 = vmatpush3.bf16.msra.mxu0 %v1746_v0  ;;  %1540 = vmatpush3.bf16.msra.mxu1 %v1791_v23 }
 0xddf   : > { %1549 = vmatprep.subr.bf16.mxu0 %v1700_v2  ;;  %1541 = vmatprep.subr.bf16.mxu1 %v1700_v2 }
 0xde0   : > { %1551 = vmatprep.mubr.msk.bf16.mxu0 %vm1701_vm1, %v1700_v2  ;;  %1543 = vmatprep.mubr.msk.bf16.mxu1 %vm1701_vm1, %v1700_v2 }
 0xde2   : > { %1550 = vmatpush3.bf16.msra.mxu0 %v1748_v1  ;;  %1542 = vmatpush3.bf16.msra.mxu1 %v1795_v24 }
 0xde3   : > { %1563 = vmatprep.subr.bf16.mxu0 %v1700_v2  ;;  %1555 = vmatprep.subr.bf16.mxu1 %v1700_v2 }
 0xeb0   : > { %v862_v11 = vpop.f32.mrb[16].mxu1  ;;  %v906_v12 = vpop.f32.mrb[20].mxu0 }
 0xeb1   : > { %1380 = vst [vmem:[%s1763_s30 + $0x20] sm:$0xff] %v862_v11  ;;  %v912_v13 = vadd.f32 %v1381_v10, %v906_v12  ;;  %v1529_v14 = vpop.f32.mrb[17].mxu1  ;;  %v1537_v15 = vpop.f32.mrb[21].mxu0 }
 0xeb2   : > { %v865_v16 = vpop.f32.mrb[18].mxu1  ;;  %v909_v17 = vpop.f32.mrb[22].mxu0 }
 0xeb3   : > { %1650 = vtanh.f32 %v912_v13  ;;  %v1530_v18 = vpop.f32.mrb[19].mxu1  ;;  %v1538_v19 = vpop.f32.mrb[23].mxu0  ;;  %v1383_v21 = vmul.f32 -1.442695, %v912_v13 }
 0xeb5   : > { %1652 = vpow2.f32 %v1383_v21 }
 0xebd   : > { %v1651_v20 = vpop.eup %1650 }
 0xebe   : > { %922 = vrot.lane.b32.xlu1 %v1651_v20, %s1702_s4 }
 0xebf   : > { %v1653_v22 = vpop.eup %1652 }
 0xec0   : > { %v916_v25 = vadd.f32 1.0, %v1653_v22 }
 0xec2   : > { %1654 = vrcp.f32 %v916_v25 }
 0xecc   : > { %v1655_v26 = vpop.eup %1654 }
 0xecd   : > { %v920_v29 = vmul.f32 %v1655_v26, %v814_v4 }
 0xf30   : > { %v923_v27 = vpop.permute.xlu1 %922 }
 0xf31   : > { %v925_v28 = vmul.f32 %v1655_v26, %v923_v27 }
 0xf33   : > { %927 = vrot.lane.b32.xlu0 %v925_v28, %s1703_s5 }
 0xfa5   : > { %v928_v30 = vpop.permute.xlu0 %927 }
 0xfa6   : > { %v930_v31 = vadd.f32 %v928_v30, %v920_v29 }
 0xfa8   : > { %1656 = vtanh.f32 %v930_v31 }
 0xfb2   : > { %v1657_v32 = vpop.eup %1656 }
 0xfb3   : > { %933 = vrot.lane.b32.xlu1 %v1657_v32, %s1702_s4 }
0x1025   : > { %v934_v33 = vpop.permute.xlu1 %933 }
0x1026   : > { %v936_v34 = vmul.f32 %v1655_v26, %v934_v33 }
0x1028   : > { %v937_v35 = vpack.c.bf16 %v936_v34, %v936_v34 }
0x102a   : > { %939 = vrot.lane.b32.xlu0 %v937_v35, %s1703_s5 }
0x109c   : > { %v940_v36 = vpop.permute.xlu0 %939 }
0x109d   : > { %1544 = vmatmul.mubr.msk.bf16.vlgmr.msra.gmra.mrb[20].mxu1 %vm256_vm0, %v940_v36  ;;  %1552 = vmatmul.mubr.msk.bf16.vlgmr.msra.gmra.mrb[24].mxu0 %vm256_vm0, %v940_v36 }
0x109e   : > { %1564 = vmatpush3.bf16.msra.mxu0 %v1746_v0  ;;  %1556 = vmatpush3.bf16.msra.mxu1 %v1791_v23 }
0x109f   : > { %1565 = vmatprep.subr.bf16.mxu0 %v1700_v2  ;;  %1557 = vmatprep.subr.bf16.mxu1 %v1700_v2 }
0x10a0   : > { %1567 = vmatprep.mubr.msk.bf16.mxu0 %vm1701_vm1, %v1700_v2  ;;  %1559 = vmatprep.mubr.msk.bf16.mxu1 %vm1701_vm1, %v1700_v2 }
0x10a2   : > { %1566 = vmatpush3.bf16.msra.mxu0 %v1748_v1  ;;  %1558 = vmatpush3.bf16.msra.mxu1 %v1795_v24 }
0x10a3   : > { %1571 = vmatprep.subr.bf16.mxu1 %v1700_v2 }
0x1170   : > { %v978_v0 = vpop.f32.mrb[20].mxu1  ;;  %v1022_v38 = vpop.f32.mrb[24].mxu0 }
0x1171   : > { %1385 = vst [vmem:[%s1763_s30 + $0x28] sm:$0xff] %v978_v0  ;;  %v1028_v39 = vadd.f32 %v1386_v37, %v1022_v38  ;;  %v1545_v40 = vpop.f32.mrb[21].mxu1  ;;  %v1553_v41 = vpop.f32.mrb[25].mxu0 }
0x1172   : > { %v981_v42 = vpop.f32.mrb[22].mxu1  ;;  %v1025_v43 = vpop.f32.mrb[26].mxu0 }
0x1173   : > { %1658 = vtanh.f32 %v1028_v39  ;;  %v1546_v44 = vpop.f32.mrb[23].mxu1  ;;  %v1554_v45 = vpop.f32.mrb[27].mxu0  ;;  %v1388_v1 = vmul.f32 -1.442695, %v1028_v39 }
0x1175   : > { %1660 = vpow2.f32 %v1388_v1 }
0x117d   : > { %v1659_v46 = vpop.eup %1658 }
0x117e   : > { %1038 = vrot.lane.b32.xlu1 %v1659_v46, %s1702_s4 }
0x117f   : > { %v1661_v47 = vpop.eup %1660 }
0x1180   : > { %v1032_v48 = vadd.f32 1.0, %v1661_v47 }
0x1182   : > { %1662 = vrcp.f32 %v1032_v48 }
0x118c   : > { %v1663_v49 = vpop.eup %1662 }
0x118d   : > { %v1036_v52 = vmul.f32 %v1663_v49, %v930_v31 }
0x11f0   : > { %v1039_v50 = vpop.permute.xlu1 %1038 }
0x11f1   : > { %v1041_v51 = vmul.f32 %v1663_v49, %v1039_v50 }
0x11f3   : > { %1043 = vrot.lane.b32.xlu0 %v1041_v51, %s1703_s5 }
0x1265   : > { %v1044_v53 = vpop.permute.xlu0 %1043 }
0x1266   : > { %v1046_v54 = vadd.f32 %v1044_v53, %v1036_v52 }
0x1268   : > { %1664 = vtanh.f32 %v1046_v54 }
0x1272   : > { %v1665_v55 = vpop.eup %1664 }
0x1273   : > { %1049 = vrot.lane.b32.xlu1 %v1665_v55, %s1702_s4 }
0x12e5   : > { %v1050_v56 = vpop.permute.xlu1 %1049 }
0x12e6   : > { %v1052_v57 = vmul.f32 %v1663_v49, %v1050_v56 }
0x12e8   : > { %v1053_v58 = vpack.c.bf16 %v1052_v57, %v1052_v57 }
0x12ea   : > { %1055 = vrot.lane.b32.xlu0 %v1053_v58, %s1703_s5 }
0x135c   : > { %v1056_v59 = vpop.permute.xlu0 %1055 }
0x135d   : > { %1560 = vmatmul.mubr.msk.bf16.vlgmr.msra.gmra.mrb[24].mxu1 %vm256_vm0, %v1056_v59  ;;  %1568 = vmatmul.mubr.msk.bf16.vlgmr.msra.gmra.mrb[28].mxu0 %vm256_vm0, %v1056_v59 }
0x135e   : > { %1572 = vmatpush3.bf16.msra.mxu1 %v1791_v23  ;;  %1575 = vmatprep.mubr.msk.bf16.mxu1 %vm1701_vm1, %v1700_v2 }
0x135f   : > { %1573 = vmatprep.subr.bf16.mxu1 %v1700_v2 }
0x1362   : > { %1574 = vmatpush3.bf16.msra.mxu1 %v1795_v24 }
0x1430   : > { %v1094_v61 = vpop.f32.mrb[24].mxu1  ;;  %v1138_v62 = vpop.f32.mrb[28].mxu0 }
0x1431   : > { %1390 = vst [vmem:[%s1763_s30 + $0x30] sm:$0xff] %v1094_v61  ;;  %v1144_v63 = vadd.f32 %v1391_v60, %v1138_v62  ;;  %v1561_v3 = vpop.f32.mrb[25].mxu1  ;;  %v1569_v4 = vpop.f32.mrb[29].mxu0 }
0x1432   : > { %v1097_v5 = vpop.f32.mrb[26].mxu1  ;;  %v1141_v6 = vpop.f32.mrb[30].mxu0 }
0x1433   : > { %1666 = vtanh.f32 %v1144_v63  ;;  %v1562_v7 = vpop.f32.mrb[27].mxu1  ;;  %v1570_v8 = vpop.f32.mrb[31].mxu0  ;;  %v1393_v9 = vmul.f32 -1.442695, %v1144_v63 }
0x1435   : > { %1668 = vpow2.f32 %v1393_v9 }
0x143d   : > { %v1667_v23 = vpop.eup %1666 }
0x143e   : > { %1154 = vrot.lane.b32.xlu1 %v1667_v23, %s1702_s4 }
0x143f   : > { %v1669_v2 = vpop.eup %1668 }
0x1440   : > { %v1148_v10 = vadd.f32 1.0, %v1669_v2 }
0x1442   : > { %1670 = vrcp.f32 %v1148_v10 }
0x144c   : > { %v1671_v24 = vpop.eup %1670 }
0x144d   : > { %v1152_v13 = vmul.f32 %v1671_v24, %v1046_v54 }
0x14b0   : > { %v1155_v11 = vpop.permute.xlu1 %1154 }
0x14b1   : > { %v1157_v12 = vmul.f32 %v1671_v24, %v1155_v11 }
0x14b3   : > { %1159 = vrot.lane.b32.xlu0 %v1157_v12, %s1703_s5 }
0x1525   : > { %v1160_v14 = vpop.permute.xlu0 %1159 }
0x1526   : > { %v1162_v15 = vadd.f32 %v1160_v14, %v1152_v13 }
0x1528   : > { %1672 = vtanh.f32 %v1162_v15 }
0x1532   : > { %v1673_v16 = vpop.eup %1672 }
0x1533   : > { %1165 = vrot.lane.b32.xlu1 %v1673_v16, %s1702_s4 }
0x15a5   : > { %v1166_v17 = vpop.permute.xlu1 %1165 }
0x15a6   : > { %v1168_v18 = vmul.f32 %v1671_v24, %v1166_v17 }
0x15a8   : > { %v1169_v19 = vpack.c.bf16 %v1168_v18, %v1168_v18  ;;  %1219 = vrot.lane.b32.xlu1 %v1168_v18, %s1703_s5 }
0x15aa   : > { %1171 = vrot.lane.b32.xlu0 %v1169_v19, %s1703_s5 }
0x15ae   : > { %1224 = vrot.lane.b32.xlu0 %v1162_v15, %s1704_s6 }
0x161a   : > { %v1220_v20 = vpop.permute.xlu1 %1219 }
0x161b   : > { %1222 = vst.msk [vmem:[#allocation3] sm:$0xff] %vm256_vm0, %v1220_v20 }
0x161c   : > { %v1172_v21 = vpop.permute.xlu0 %1171 }
0x161d   : > { %1576 = vmatmul.mubr.msk.bf16.vlgmr.msra.gmra.mrb[28].mxu1 %vm256_vm0, %v1172_v21 }
0x1620   : > { %v1225_v22 = vpop.permute.xlu0 %1224 }
0x1621   : > { %1227 = vst.msk [vmem:[#allocation4] sm:$0xff] %vm256_vm0, %v1225_v22 }
0x16f0   : > { %v1210_v25 = vpop.f32.mrb[28].mxu1 }
0x16f1   : > { %1395 = vst [vmem:[%s1763_s30 + $0x38] sm:$0xff] %v1210_v25  ;;  %v1577_v26 = vpop.f32.mrb[29].mxu1 }
0x16f2   : > { %v1213_v27 = vpop.f32.mrb[30].mxu1 }
0x16f3   : > { %v1578_v28 = vpop.f32.mrb[31].mxu1 }
0x16f4 PF: > { %s13_s14 = sadd.s32 1, %s1698_s14   ;;  %s1952_s12 = smov %s1694_s13 }
0x16f5   : > { %p10_p5 = scmp.ge.s32.totalorder %s13_s14, 4   ;;  %s1953_s13 = smov %s1955_s15 }
0x16f7   :  { %12 = sbr.rel (!%p10_p5) target bundleno = 2 (0x2), region = 122 }
0x16fe   :  { %1258 = vsyncmov [#allocation5] }
0x1701   :  { %s1259_s7 = vpop.sfrf %1258 }
0x1702   :  { %p1398_p6 = scmp.ne.s32.totalorder %s1259_s7, 0 }
0x1704   :  { %1263 = shalt.err (%p1398_p6)  }

</bundles_post_ra>
